<compile_context>
chip_gen: v7x
topology: tpu7x:2x2x1
jax: 0.10.0
libtpu: 0.0.40
codegen_flags: <defaults>
</compile_context>

<pallas_src>
import functools

import jax
import jax.numpy as jnp
from jax.experimental import pallas as pl
from jax.experimental.pallas import tpu as pltpu

ACT_DTYPE = jnp.bfloat16   # activations + large weights (halves HBM bytes, MXU-native)


def _vmem_limit_bytes():
    cap = 128 * 1024 * 1024
    try:
        cap = int(getattr(pltpu.get_tpu_info(), "vmem_capacity_bytes", cap))
    except Exception:
        pass
    # leave headroom for double-buffered weight DMA + compiler scratch
    return int(min(cap * 3 // 4, 96 * 1024 * 1024))


# ----------------------------------------------------------------------------
# Fused kernel: DModule + (M-1) x Caam_Module + GAP + FC, one grid step per
# (batch tile, iteration).  c/s live in f32 VMEM scratch across iterations.
# ----------------------------------------------------------------------------
def _fused_kernel(x_ref, mwt_ref, mb_ref, w1_ref, b1_ref, w2_ref, b2_ref,
                  fcw_ref, fcb_ref, out_ref, c_scr, s_scr, *, hw_true):
    m = pl.program_id(1)
    last = pl.num_programs(1) - 1
    Bt, HW_pad, C = c_scr.shape
    inv_hw = 1.0 / float(hw_true)

    if hw_true == HW_pad:
        row_mask = None
    else:
        ridx = jax.lax.broadcasted_iota(jnp.int32, (1, HW_pad, 1), 1)
        row_mask = ridx < hw_true

    def _masked(v, fill):
        return v if row_mask is None else jnp.where(row_mask, v, fill)

    def _attn(x):
        # CBAM channel attention: avg+max pooled rows through a shared 2-layer MLP.
        avg = jnp.sum(_masked(x, 0.0), axis=1, keepdims=True) * inv_hw     # (Bt,1,C)
        mx = jnp.max(_masked(x, -jnp.inf), axis=1, keepdims=True)          # (Bt,1,C)
        # stack avg (row 0) and max (rows 1..7) so the MLP is one MXU pass
        r = jax.lax.broadcasted_iota(jnp.int32, (Bt, 8, C), 1)
        p = jnp.where(r == 0, avg, mx).reshape(Bt * 8, C)
        h = (jnp.dot(p.astype(w1_ref.dtype), w1_ref[...],
                     preferred_element_type=jnp.float32)
             + b1_ref[...].astype(jnp.float32))
        h = jnp.maximum(h, 0.0)
        q = (jnp.dot(h.astype(w2_ref.dtype), w2_ref[...],
                     preferred_element_type=jnp.float32)
             + b2_ref[...].astype(jnp.float32))
        q = q.reshape(Bt, 8, C)
        return q[:, 0:1, :] + q[:, 1:2, :]                                 # (Bt,1,C)

    @pl.when(m == 0)   # top-level DModule; c_pre = s_pre = ones folded in as +1.0
    def _():
        x = x_ref[...].astype(jnp.float32)
        sig = jax.nn.sigmoid(_attn(x))
        c_scr[...] = sig * x + 1.0
        s_scr[...] = (1.0 - sig) * x + 1.0            # sigmoid(-z) == 1 - sigmoid(z)

    @pl.when(m > 0)    # one Caam_Module iteration
    def _():
        c = c_scr[...]
        s = s_scr[...]
        # MModule: conv1x1(c) + conv1x1(s) == (c + s) @ W^T + 2*b  (shared weights)
        cs = (c + s).reshape(Bt * HW_pad, C).astype(mwt_ref.dtype)
        xm = (jnp.dot(cs, mwt_ref[...], preferred_element_type=jnp.float32)
              .reshape(Bt, HW_pad, C)
              + 2.0 * mb_ref[...].astype(jnp.float32).reshape(1, 1, C))
        sig = jax.nn.sigmoid(_attn(xm))
        c_scr[...] = sig * xm + 2.0 * c               # (sig(z)*xm + c) + c
        s_scr[...] = (1.0 - sig) * xm + 2.0 * s       # (sig(-z)*xm + s) + s

    @pl.when(m == last)   # GAP + FC fused into the final iteration
    def _():
        c = c_scr[...]
        pooled = (jnp.sum(_masked(c, 0.0), axis=1, keepdims=True) * inv_hw
                  ).reshape(Bt, C)
        logits = (jnp.dot(pooled, fcw_ref[...], preferred_element_type=jnp.float32)
                  + fcb_ref[...])
        out_ref[...] = logits.reshape(Bt, 1, logits.shape[-1])


# ----------------------------------------------------------------------------
# Wrapper (pallas_call setup)
# ----------------------------------------------------------------------------
def _pick_bt(B, HW_pad, C):
    # ~24 MiB budget of live per-block activations (x bf16 + 2x f32 scratch + temps)
    per_img = HW_pad * C * 40
    bt = max(1, min(B, (24 * 1024 * 1024) // max(per_img, 1)))
    while B % bt:           # largest divisor of B not exceeding the budget
        bt -= 1
    return bt


def caam_chain(x, params, hw_true):
    B, HW_pad, C = x.shape
    M = params["cbam_w1"].shape[0]
    Cr = params["cbam_w1"].shape[2]
    N = params["fc_w"].shape[1]
    Bt = _pick_bt(B, HW_pad, C)
    nb = B // Bt
    # v7x note: "parallel" on the batch axis duplicates the weight DMA per core;
    # only split across cores when there are enough batch tiles to pay for it.
    batch_sem = "parallel" if nb >= 4 else "arbitrary"

    kernel = functools.partial(_fused_kernel, hw_true=hw_true)
    out = pl.pallas_call(
        kernel,
        out_shape=jax.ShapeDtypeStruct((B, 1, N), jnp.float32),
        grid=(nb, M),
        in_specs=[
            pl.BlockSpec((Bt, HW_pad, C), lambda b, m: (b, 0, 0)),                 # x
            pl.BlockSpec((None, C, C), lambda b, m: (jnp.maximum(m - 1, 0), 0, 0)),  # merge W^T
            pl.BlockSpec((None, 1, C), lambda b, m: (jnp.maximum(m - 1, 0), 0, 0)),  # merge b
            pl.BlockSpec((None, C, Cr), lambda b, m: (m, 0, 0)),                   # cbam w1
            pl.BlockSpec((None, 1, Cr), lambda b, m: (m, 0, 0)),                   # cbam b1
            pl.BlockSpec((None, Cr, C), lambda b, m: (m, 0, 0)),                   # cbam w2
            pl.BlockSpec((None, 1, C), lambda b, m: (m, 0, 0)),                    # cbam b2
            pl.BlockSpec((C, N), lambda b, m: (0, 0)),                             # fc W^T
            pl.BlockSpec((1, N), lambda b, m: (0, 0)),                             # fc b
        ],
        out_specs=pl.BlockSpec((Bt, 1, N), lambda b, m: (b, 0, 0)),
        scratch_shapes=[pltpu.VMEM((Bt, HW_pad, C), jnp.float32),   # c carry
                        pltpu.VMEM((Bt, HW_pad, C), jnp.float32)],  # s carry
        compiler_params=pltpu.CompilerParams(
            dimension_semantics=(batch_sem, "arbitrary"),
            vmem_limit_bytes=_vmem_limit_bytes()),
    )(x, params["merge_wt"], params["merge_b"],
      params["cbam_w1"], params["cbam_b1"], params["cbam_w2"], params["cbam_b2"],
      params["fc_w"], params["fc_b"])
    return out.reshape(B, N)


def resnet50_caam_forward(x_nchw, params):
    # TODO(synk): ResNet50_Layers backbone not provided; x_nchw is treated as the
    #             backbone feature map directly.
    B, C, H, W = x_nchw.shape
    HW = H * W
    HW_pad = ((HW + 15) // 16) * 16          # sublane-friendly for bf16 and f32
    x = jnp.transpose(x_nchw, (0, 2, 3, 1)).reshape(B, HW, C)
    if HW_pad != HW:
        x = jnp.pad(x, ((0, 0), (0, HW_pad - HW), (0, 0)))
    return caam_chain(x.astype(ACT_DTYPE), params, HW)


# ----------------------------------------------------------------------------
# Parameter init (deterministic, synthetic): weights stacked along the
# iteration axis so a single pallas_call can stream them.
# ----------------------------------------------------------------------------
def init_params(key, C, numclass, M=4, reduction=4):
    Cr = max(C // reduction, 1)
    Mm = max(M - 1, 1)
    keys = iter(jax.random.split(key, 4 * M + 2 * Mm + 2))

    def nrm(shape, dtype=jnp.float32):
        return (0.1 * jax.random.normal(next(keys), shape, jnp.float32)).astype(dtype)

    return dict(
        # cbam index 0 -> top-level DModule, indices 1..M-1 -> Caam iterations
        cbam_w1=nrm((M, C, Cr), ACT_DTYPE),
        cbam_b1=nrm((M, 1, Cr)),
        cbam_w2=nrm((M, Cr, C), ACT_DTYPE),
        cbam_b2=nrm((M, 1, C)),
        merge_wt=nrm((Mm, C, C), ACT_DTYPE),   # W^T (in -> out)
        merge_b=nrm((Mm, 1, C)),
        fc_w=nrm((C, numclass)),               # W^T
        fc_b=nrm((1, numclass)),
    )


if __name__ == "__main__":
    key = jax.random.PRNGKey(0)
    kx, kp = jax.random.split(key)

    # small synthetic shapes standing in for the (B, 2048, 7, 7) ResNet50 feature map
    B, C, H, W = 2, 32, 8, 8
    numclass = 10

    x = jax.random.normal(kx, (B, C, H, W), jnp.float32)
    params = init_params(kp, C, numclass, M=4, reduction=4)

    out = jax.jit(resnet50_caam_forward)(x, params)
    out = jax.block_until_ready(out)
    assert out.shape == (B, numclass) and out.dtype == jnp.float32
    print("KERNEL_OK")
</pallas_src>

<mosaic_0001>
module attributes {stable_mosaic.version = 11 : i64} {
  func.func @_fused_kernel(%arg0: i32, %arg1: i32, %arg2: memref<2x64x32xbf16, #tpu.memory_space<vmem>>, %arg3: memref<1x32x32xbf16, #tpu.memory_space<vmem>>, %arg4: memref<1x1x32xf32, #tpu.memory_space<vmem>>, %arg5: memref<1x32x8xbf16, #tpu.memory_space<vmem>>, %arg6: memref<1x1x8xf32, #tpu.memory_space<vmem>>, %arg7: memref<1x8x32xbf16, #tpu.memory_space<vmem>>, %arg8: memref<1x1x32xf32, #tpu.memory_space<vmem>>, %arg9: memref<32x10xf32, #tpu.memory_space<vmem>>, %arg10: memref<1x10xf32, #tpu.memory_space<vmem>>, %arg11: memref<2x1x10xf32, #tpu.memory_space<vmem>>, %arg12: memref<2x64x32xf32, #tpu.memory_space<vmem>>, %arg13: memref<2x64x32xf32, #tpu.memory_space<vmem>>) attributes {dimension_semantics = [#tpu.dimension_semantics<arbitrary>, #tpu.dimension_semantics<arbitrary>], iteration_bounds = array<i64: 1, 4>, scalar_prefetch = 0 : i64, scratch_operands = 2 : i64, tpu.core_type = #tpu.core_type<tc>, window_params = [{transform_indices = @transform_0, window_bounds = array<i64: 2, 64, 32>}, {transform_indices = @transform_1, window_bounds = array<i64: 1, 32, 32>}, {transform_indices = @transform_2, window_bounds = array<i64: 1, 1, 32>}, {transform_indices = @transform_3, window_bounds = array<i64: 1, 32, 8>}, {transform_indices = @transform_4, window_bounds = array<i64: 1, 1, 8>}, {transform_indices = @transform_5, window_bounds = array<i64: 1, 8, 32>}, {transform_indices = @transform_6, window_bounds = array<i64: 1, 1, 32>}, {pipeline_mode = #tpu.pipeline_mode<synchronous>, transform_indices = @transform_7, window_bounds = array<i64: 32, 10>}, {pipeline_mode = #tpu.pipeline_mode<synchronous>, transform_indices = @transform_8, window_bounds = array<i64: 1, 10>}, {transform_indices = @transform_9, window_bounds = array<i64: 2, 1, 10>}]} {
    %c0_i32 = arith.constant 0 : i32
    %0 = arith.cmpi eq, %arg1, %c0_i32 : i32
    %1 = arith.extui %0 : i1 to i32
    %c0_i32_0 = arith.constant 0 : i32
    %2 = arith.cmpi ne, %1, %c0_i32_0 : i32
    scf.if %2 {
      %c0 = arith.constant 0 : index
      %c0_4 = arith.constant 0 : index
      %c0_5 = arith.constant 0 : index
      %9 = vector.load %arg2[%c0, %c0_4, %c0_5] : memref<2x64x32xbf16, #tpu.memory_space<vmem>>, vector<2x64x32xbf16>
      %10 = arith.extf %9 : vector<2x64x32xbf16> to vector<2x64x32xf32>
      %cst = arith.constant dense<0.000000e+00> : vector<2x32xf32>
      %11 = vector.multi_reduction <add>, %10, %cst [1] : vector<2x64x32xf32> to vector<2x32xf32>
      %12 = vector.shape_cast %11 : vector<2x32xf32> to vector<2x1x32xf32>
      %cst_6 = arith.constant 1.562500e-02 : f32
      %13 = vector.broadcast %cst_6 : f32 to vector<2x1x32xf32>
      %14 = arith.mulf %12, %13 : vector<2x1x32xf32>
      %cst_7 = arith.constant dense<0xFF800000> : vector<2x32xf32>
      %15 = vector.multi_reduction <maximumf>, %10, %cst_7 [1] : vector<2x64x32xf32> to vector<2x32xf32>
      %16 = vector.shape_cast %15 : vector<2x32xf32> to vector<2x1x32xf32>
      %17 = tpu.iota {dimensions = array<i32: 1>} : vector<2x8x32xi32>
      %c0_i32_8 = arith.constant 0 : i32
      %18 = vector.broadcast %c0_i32_8 : i32 to vector<2x8x32xi32>
      %19 = arith.cmpi eq, %17, %18 : vector<2x8x32xi32>
      %20 = vector.shape_cast %14 : vector<2x1x32xf32> to vector<2x1x32xf32>
      %21 = vector.broadcast %20 : vector<2x1x32xf32> to vector<2x8x32xf32>
      %22 = vector.shape_cast %16 : vector<2x1x32xf32> to vector<2x1x32xf32>
      %23 = vector.broadcast %22 : vector<2x1x32xf32> to vector<2x8x32xf32>
      %24 = arith.select %19, %21, %23 : vector<2x8x32xi1>, vector<2x8x32xf32>
      %25 = vector.shape_cast %24 : vector<2x8x32xf32> to vector<16x32xf32>
      %26 = arith.truncf %25 : vector<16x32xf32> to vector<16x32xbf16>
      %c0_9 = arith.constant 0 : index
      %c0_10 = arith.constant 0 : index
      %c0_11 = arith.constant 0 : index
      %27 = vector.load %arg5[%c0_9, %c0_10, %c0_11] : memref<1x32x8xbf16, #tpu.memory_space<vmem>>, vector<1x32x8xbf16>
      %28 = vector.shape_cast %27 : vector<1x32x8xbf16> to vector<32x8xbf16>
      %cst_12 = arith.constant dense<0.000000e+00> : vector<16x8xf32>
      %29 = tpu.matmul %26, %28, %cst_12 {dimension_numbers = #tpu.dot_dimension_numbers<[1], [0], [0], [1], [0, 0, 1, 1], [], []>} : vector<16x32xbf16>, vector<32x8xbf16>, vector<16x8xf32> -> vector<16x8xf32>
      %c0_13 = arith.constant 0 : index
      %c0_14 = arith.constant 0 : index
      %c0_15 = arith.constant 0 : index
      %30 = vector.load %arg6[%c0_13, %c0_14, %c0_15] : memref<1x1x8xf32, #tpu.memory_space<vmem>>, vector<1x1x8xf32>
      %31 = vector.shape_cast %30 : vector<1x1x8xf32> to vector<1x8xf32>
      %32 = vector.broadcast %31 : vector<1x8xf32> to vector<16x8xf32>
      %33 = arith.addf %29, %32 : vector<16x8xf32>
      %cst_16 = arith.constant 0.000000e+00 : f32
      %34 = vector.broadcast %cst_16 : f32 to vector<16x8xf32>
      %35 = arith.maximumf %33, %34 : vector<16x8xf32>
      %36 = arith.truncf %35 : vector<16x8xf32> to vector<16x8xbf16>
      %c0_17 = arith.constant 0 : index
      %c0_18 = arith.constant 0 : index
      %c0_19 = arith.constant 0 : index
      %37 = vector.load %arg7[%c0_17, %c0_18, %c0_19] : memref<1x8x32xbf16, #tpu.memory_space<vmem>>, vector<1x8x32xbf16>
      %38 = vector.shape_cast %37 : vector<1x8x32xbf16> to vector<8x32xbf16>
      %cst_20 = arith.constant dense<0.000000e+00> : vector<16x32xf32>
      %39 = tpu.matmul %36, %38, %cst_20 {dimension_numbers = #tpu.dot_dimension_numbers<[1], [0], [0], [1], [0, 0, 1, 1], [], []>} : vector<16x8xbf16>, vector<8x32xbf16>, vector<16x32xf32> -> vector<16x32xf32>
      %c0_21 = arith.constant 0 : index
      %c0_22 = arith.constant 0 : index
      %c0_23 = arith.constant 0 : index
      %40 = vector.load %arg8[%c0_21, %c0_22, %c0_23] : memref<1x1x32xf32, #tpu.memory_space<vmem>>, vector<1x1x32xf32>
      %41 = vector.shape_cast %40 : vector<1x1x32xf32> to vector<1x32xf32>
      %42 = vector.broadcast %41 : vector<1x32xf32> to vector<16x32xf32>
      %43 = arith.addf %39, %42 : vector<16x32xf32>
      %44 = vector.shape_cast %43 : vector<16x32xf32> to vector<2x8x32xf32>
      %45 = vector.extract_strided_slice %44 {offsets = [0, 0, 0], sizes = [2, 1, 32], strides = [1, 1, 1]} : vector<2x8x32xf32> to vector<2x1x32xf32>
      %46 = vector.extract_strided_slice %44 {offsets = [0, 1, 0], sizes = [2, 1, 32], strides = [1, 1, 1]} : vector<2x8x32xf32> to vector<2x1x32xf32>
      %47 = arith.addf %45, %46 : vector<2x1x32xf32>
      %48 = arith.negf %47 : vector<2x1x32xf32>
      %49 = math.exp %48 : vector<2x1x32xf32>
      %cst_24 = arith.constant 1.000000e+00 : f32
      %50 = vector.broadcast %cst_24 : f32 to vector<2x1x32xf32>
      %51 = arith.addf %50, %49 : vector<2x1x32xf32>
      %52 = arith.divf %50, %51 : vector<2x1x32xf32>
      %53 = vector.broadcast %52 : vector<2x1x32xf32> to vector<2x64x32xf32>
      %54 = arith.mulf %53, %10 : vector<2x64x32xf32>
      %cst_25 = arith.constant 1.000000e+00 : f32
      %55 = vector.broadcast %cst_25 : f32 to vector<2x64x32xf32>
      %56 = arith.addf %54, %55 : vector<2x64x32xf32>
      %c0_26 = arith.constant 0 : index
      %c0_27 = arith.constant 0 : index
      %c0_28 = arith.constant 0 : index
      %57 = vector.load %arg12[%c0_26, %c0_27, %c0_28] : memref<2x64x32xf32, #tpu.memory_space<vmem>>, vector<2x64x32xf32>
      tpu.vector_store %arg12[%c0_26, %c0_27, %c0_28], %56 {strides = array<i32>} : memref<2x64x32xf32, #tpu.memory_space<vmem>>, vector<2x64x32xf32>,
      %cst_29 = arith.constant 1.000000e+00 : f32
      %58 = vector.broadcast %cst_29 : f32 to vector<2x1x32xf32>
      %59 = arith.subf %58, %52 : vector<2x1x32xf32>
      %60 = vector.broadcast %59 : vector<2x1x32xf32> to vector<2x64x32xf32>
      %61 = arith.mulf %60, %10 : vector<2x64x32xf32>
      %cst_30 = arith.constant 1.000000e+00 : f32
      %62 = vector.broadcast %cst_30 : f32 to vector<2x64x32xf32>
      %63 = arith.addf %61, %62 : vector<2x64x32xf32>
      %c0_31 = arith.constant 0 : index
      %c0_32 = arith.constant 0 : index
      %c0_33 = arith.constant 0 : index
      %64 = vector.load %arg13[%c0_31, %c0_32, %c0_33] : memref<2x64x32xf32, #tpu.memory_space<vmem>>, vector<2x64x32xf32>
      tpu.vector_store %arg13[%c0_31, %c0_32, %c0_33], %63 {strides = array<i32>} : memref<2x64x32xf32, #tpu.memory_space<vmem>>, vector<2x64x32xf32>,
    } else {
    }
    %c0_i32_1 = arith.constant 0 : i32
    %3 = arith.cmpi sgt, %arg1, %c0_i32_1 : i32
    %4 = arith.extui %3 : i1 to i32
    %c0_i32_2 = arith.constant 0 : i32
    %5 = arith.cmpi ne, %4, %c0_i32_2 : i32
    scf.if %5 {
      %c0 = arith.constant 0 : index
      %c0_4 = arith.constant 0 : index
      %c0_5 = arith.constant 0 : index
      %9 = vector.load %arg12[%c0, %c0_4, %c0_5] : memref<2x64x32xf32, #tpu.memory_space<vmem>>, vector<2x64x32xf32>
      %c0_6 = arith.constant 0 : index
      %c0_7 = arith.constant 0 : index
      %c0_8 = arith.constant 0 : index
      %10 = vector.load %arg13[%c0_6, %c0_7, %c0_8] : memref<2x64x32xf32, #tpu.memory_space<vmem>>, vector<2x64x32xf32>
      %11 = arith.addf %9, %10 : vector<2x64x32xf32>
      %12 = vector.shape_cast %11 : vector<2x64x32xf32> to vector<128x32xf32>
      %13 = arith.truncf %12 : vector<128x32xf32> to vector<128x32xbf16>
      %c0_9 = arith.constant 0 : index
      %c0_10 = arith.constant 0 : index
      %c0_11 = arith.constant 0 : index
      %14 = vector.load %arg3[%c0_9, %c0_10, %c0_11] : memref<1x32x32xbf16, #tpu.memory_space<vmem>>, vector<1x32x32xbf16>
      %15 = vector.shape_cast %14 : vector<1x32x32xbf16> to vector<32x32xbf16>
      %cst = arith.constant dense<0.000000e+00> : vector<128x32xf32>
      %16 = tpu.matmul %13, %15, %cst {dimension_numbers = #tpu.dot_dimension_numbers<[1], [0], [0], [1], [0, 0, 1, 1], [], []>} : vector<128x32xbf16>, vector<32x32xbf16>, vector<128x32xf32> -> vector<128x32xf32>
      %17 = vector.shape_cast %16 : vector<128x32xf32> to vector<2x64x32xf32>
      %c0_12 = arith.constant 0 : index
      %c0_13 = arith.constant 0 : index
      %c0_14 = arith.constant 0 : index
      %18 = vector.load %arg4[%c0_12, %c0_13, %c0_14] : memref<1x1x32xf32, #tpu.memory_space<vmem>>, vector<1x1x32xf32>
      %19 = vector.shape_cast %18 : vector<1x1x32xf32> to vector<1x32xf32>
      %20 = vector.shape_cast %19 : vector<1x32xf32> to vector<1x1x32xf32>
      %cst_15 = arith.constant 2.000000e+00 : f32
      %21 = vector.broadcast %cst_15 : f32 to vector<1x1x32xf32>
      %22 = arith.mulf %21, %20 : vector<1x1x32xf32>
      %23 = vector.broadcast %22 : vector<1x1x32xf32> to vector<2x64x32xf32>
      %24 = arith.addf %17, %23 : vector<2x64x32xf32>
      %cst_16 = arith.constant dense<0.000000e+00> : vector<2x32xf32>
      %25 = vector.multi_reduction <add>, %24, %cst_16 [1] : vector<2x64x32xf32> to vector<2x32xf32>
      %26 = vector.shape_cast %25 : vector<2x32xf32> to vector<2x1x32xf32>
      %cst_17 = arith.constant 1.562500e-02 : f32
      %27 = vector.broadcast %cst_17 : f32 to vector<2x1x32xf32>
      %28 = arith.mulf %26, %27 : vector<2x1x32xf32>
      %cst_18 = arith.constant dense<0xFF800000> : vector<2x32xf32>
      %29 = vector.multi_reduction <maximumf>, %24, %cst_18 [1] : vector<2x64x32xf32> to vector<2x32xf32>
      %30 = vector.shape_cast %29 : vector<2x32xf32> to vector<2x1x32xf32>
      %31 = tpu.iota {dimensions = array<i32: 1>} : vector<2x8x32xi32>
      %c0_i32_19 = arith.constant 0 : i32
      %32 = vector.broadcast %c0_i32_19 : i32 to vector<2x8x32xi32>
      %33 = arith.cmpi eq, %31, %32 : vector<2x8x32xi32>
      %34 = vector.shape_cast %28 : vector<2x1x32xf32> to vector<2x1x32xf32>
      %35 = vector.broadcast %34 : vector<2x1x32xf32> to vector<2x8x32xf32>
      %36 = vector.shape_cast %30 : vector<2x1x32xf32> to vector<2x1x32xf32>
      %37 = vector.broadcast %36 : vector<2x1x32xf32> to vector<2x8x32xf32>
      %38 = arith.select %33, %35, %37 : vector<2x8x32xi1>, vector<2x8x32xf32>
      %39 = vector.shape_cast %38 : vector<2x8x32xf32> to vector<16x32xf32>
      %40 = arith.truncf %39 : vector<16x32xf32> to vector<16x32xbf16>
      %c0_20 = arith.constant 0 : index
      %c0_21 = arith.constant 0 : index
      %c0_22 = arith.constant 0 : index
      %41 = vector.load %arg5[%c0_20, %c0_21, %c0_22] : memref<1x32x8xbf16, #tpu.memory_space<vmem>>, vector<1x32x8xbf16>
      %42 = vector.shape_cast %41 : vector<1x32x8xbf16> to vector<32x8xbf16>
      %cst_23 = arith.constant dense<0.000000e+00> : vector<16x8xf32>
      %43 = tpu.matmul %40, %42, %cst_23 {dimension_numbers = #tpu.dot_dimension_numbers<[1], [0], [0], [1], [0, 0, 1, 1], [], []>} : vector<16x32xbf16>, vector<32x8xbf16>, vector<16x8xf32> -> vector<16x8xf32>
      %c0_24 = arith.constant 0 : index
      %c0_25 = arith.constant 0 : index
      %c0_26 = arith.constant 0 : index
      %44 = vector.load %arg6[%c0_24, %c0_25, %c0_26] : memref<1x1x8xf32, #tpu.memory_space<vmem>>, vector<1x1x8xf32>
      %45 = vector.shape_cast %44 : vector<1x1x8xf32> to vector<1x8xf32>
      %46 = vector.broadcast %45 : vector<1x8xf32> to vector<16x8xf32>
      %47 = arith.addf %43, %46 : vector<16x8xf32>
      %cst_27 = arith.constant 0.000000e+00 : f32
      %48 = vector.broadcast %cst_27 : f32 to vector<16x8xf32>
      %49 = arith.maximumf %47, %48 : vector<16x8xf32>
      %50 = arith.truncf %49 : vector<16x8xf32> to vector<16x8xbf16>
      %c0_28 = arith.constant 0 : index
      %c0_29 = arith.constant 0 : index
      %c0_30 = arith.constant 0 : index
      %51 = vector.load %arg7[%c0_28, %c0_29, %c0_30] : memref<1x8x32xbf16, #tpu.memory_space<vmem>>, vector<1x8x32xbf16>
      %52 = vector.shape_cast %51 : vector<1x8x32xbf16> to vector<8x32xbf16>
      %cst_31 = arith.constant dense<0.000000e+00> : vector<16x32xf32>
      %53 = tpu.matmul %50, %52, %cst_31 {dimension_numbers = #tpu.dot_dimension_numbers<[1], [0], [0], [1], [0, 0, 1, 1], [], []>} : vector<16x8xbf16>, vector<8x32xbf16>, vector<16x32xf32> -> vector<16x32xf32>
      %c0_32 = arith.constant 0 : index
      %c0_33 = arith.constant 0 : index
      %c0_34 = arith.constant 0 : index
      %54 = vector.load %arg8[%c0_32, %c0_33, %c0_34] : memref<1x1x32xf32, #tpu.memory_space<vmem>>, vector<1x1x32xf32>
      %55 = vector.shape_cast %54 : vector<1x1x32xf32> to vector<1x32xf32>
      %56 = vector.broadcast %55 : vector<1x32xf32> to vector<16x32xf32>
      %57 = arith.addf %53, %56 : vector<16x32xf32>
      %58 = vector.shape_cast %57 : vector<16x32xf32> to vector<2x8x32xf32>
      %59 = vector.extract_strided_slice %58 {offsets = [0, 0, 0], sizes = [2, 1, 32], strides = [1, 1, 1]} : vector<2x8x32xf32> to vector<2x1x32xf32>
      %60 = vector.extract_strided_slice %58 {offsets = [0, 1, 0], sizes = [2, 1, 32], strides = [1, 1, 1]} : vector<2x8x32xf32> to vector<2x1x32xf32>
      %61 = arith.addf %59, %60 : vector<2x1x32xf32>
      %62 = arith.negf %61 : vector<2x1x32xf32>
      %63 = math.exp %62 : vector<2x1x32xf32>
      %cst_35 = arith.constant 1.000000e+00 : f32
      %64 = vector.broadcast %cst_35 : f32 to vector<2x1x32xf32>
      %65 = arith.addf %64, %63 : vector<2x1x32xf32>
      %66 = arith.divf %64, %65 : vector<2x1x32xf32>
      %67 = vector.broadcast %66 : vector<2x1x32xf32> to vector<2x64x32xf32>
      %68 = arith.mulf %67, %24 : vector<2x64x32xf32>
      %cst_36 = arith.constant 2.000000e+00 : f32
      %69 = vector.broadcast %cst_36 : f32 to vector<2x64x32xf32>
      %70 = arith.mulf %69, %9 : vector<2x64x32xf32>
      %71 = arith.addf %68, %70 : vector<2x64x32xf32>
      %c0_37 = arith.constant 0 : index
      %c0_38 = arith.constant 0 : index
      %c0_39 = arith.constant 0 : index
      %72 = vector.load %arg12[%c0_37, %c0_38, %c0_39] : memref<2x64x32xf32, #tpu.memory_space<vmem>>, vector<2x64x32xf32>
      tpu.vector_store %arg12[%c0_37, %c0_38, %c0_39], %71 {strides = array<i32>} : memref<2x64x32xf32, #tpu.memory_space<vmem>>, vector<2x64x32xf32>,
      %cst_40 = arith.constant 1.000000e+00 : f32
      %73 = vector.broadcast %cst_40 : f32 to vector<2x1x32xf32>
      %74 = arith.subf %73, %66 : vector<2x1x32xf32>
      %75 = vector.broadcast %74 : vector<2x1x32xf32> to vector<2x64x32xf32>
      %76 = arith.mulf %75, %24 : vector<2x64x32xf32>
      %cst_41 = arith.constant 2.000000e+00 : f32
      %77 = vector.broadcast %cst_41 : f32 to vector<2x64x32xf32>
      %78 = arith.mulf %77, %10 : vector<2x64x32xf32>
      %79 = arith.addf %76, %78 : vector<2x64x32xf32>
      %c0_42 = arith.constant 0 : index
      %c0_43 = arith.constant 0 : index
      %c0_44 = arith.constant 0 : index
      %80 = vector.load %arg13[%c0_42, %c0_43, %c0_44] : memref<2x64x32xf32, #tpu.memory_space<vmem>>, vector<2x64x32xf32>
      tpu.vector_store %arg13[%c0_42, %c0_43, %c0_44], %79 {strides = array<i32>} : memref<2x64x32xf32, #tpu.memory_space<vmem>>, vector<2x64x32xf32>,
    } else {
    }
    %c3_i32 = arith.constant 3 : i32
    %6 = arith.cmpi eq, %arg1, %c3_i32 : i32
    %7 = arith.extui %6 : i1 to i32
    %c0_i32_3 = arith.constant 0 : i32
    %8 = arith.cmpi ne, %7, %c0_i32_3 : i32
    scf.if %8 {
      %c0 = arith.constant 0 : index
      %c0_4 = arith.constant 0 : index
      %c0_5 = arith.constant 0 : index
      %9 = vector.load %arg12[%c0, %c0_4, %c0_5] : memref<2x64x32xf32, #tpu.memory_space<vmem>>, vector<2x64x32xf32>
      %cst = arith.constant dense<0.000000e+00> : vector<2x32xf32>
      %10 = vector.multi_reduction <add>, %9, %cst [1] : vector<2x64x32xf32> to vector<2x32xf32>
      %11 = vector.shape_cast %10 : vector<2x32xf32> to vector<2x1x32xf32>
      %cst_6 = arith.constant 1.562500e-02 : f32
      %12 = vector.broadcast %cst_6 : f32 to vector<2x1x32xf32>
      %13 = arith.mulf %11, %12 : vector<2x1x32xf32>
      %14 = vector.shape_cast %13 : vector<2x1x32xf32> to vector<2x32xf32>
      %c0_7 = arith.constant 0 : index
      %c0_8 = arith.constant 0 : index
      %15 = vector.load %arg9[%c0_7, %c0_8] : memref<32x10xf32, #tpu.memory_space<vmem>>, vector<32x10xf32>
      %cst_9 = arith.constant dense<0.000000e+00> : vector<2x10xf32>
      %16 = tpu.matmul %14, %15, %cst_9 {dimension_numbers = #tpu.dot_dimension_numbers<[1], [0], [0], [1], [0, 0, 1, 1], [], []>} : vector<2x32xf32>, vector<32x10xf32>, vector<2x10xf32> -> vector<2x10xf32>
      %c0_10 = arith.constant 0 : index
      %c0_11 = arith.constant 0 : index
      %17 = vector.load %arg10[%c0_10, %c0_11] : memref<1x10xf32, #tpu.memory_space<vmem>>, vector<1x10xf32>
      %18 = vector.broadcast %17 : vector<1x10xf32> to vector<2x10xf32>
      %19 = arith.addf %16, %18 : vector<2x10xf32>
      %20 = vector.shape_cast %19 : vector<2x10xf32> to vector<2x1x10xf32>
      %c0_12 = arith.constant 0 : index
      %c0_13 = arith.constant 0 : index
      %c0_14 = arith.constant 0 : index
      %21 = vector.load %arg11[%c0_12, %c0_13, %c0_14] : memref<2x1x10xf32, #tpu.memory_space<vmem>>, vector<2x1x10xf32>
      tpu.vector_store %arg11[%c0_12, %c0_13, %c0_14], %20 {strides = array<i32>} : memref<2x1x10xf32, #tpu.memory_space<vmem>>, vector<2x1x10xf32>,
    } else {
    }
    return
  }
  func.func @transform_0(%arg0: i32, %arg1: i32) -> (i32, i32, i32) {
    %c0_i32 = arith.constant 0 : i32
    %c0_i32_0 = arith.constant 0 : i32
    %c0_i32_1 = arith.constant 0 : i32
    return %arg0, %c0_i32, %c0_i32_0 : i32, i32, i32
  }
  func.func @transform_1(%arg0: i32, %arg1: i32) -> (i32, i32, i32) {
    %c1_i32 = arith.constant 1 : i32
    %0 = arith.subi %arg1, %c1_i32 : i32
    %c0_i32 = arith.constant 0 : i32
    %1 = arith.maxsi %0, %c0_i32 : i32
    %c0_i32_0 = arith.constant 0 : i32
    %c0_i32_1 = arith.constant 0 : i32
    %c0_i32_2 = arith.constant 0 : i32
    return %1, %c0_i32_0, %c0_i32_1 : i32, i32, i32
  }
  func.func @transform_2(%arg0: i32, %arg1: i32) -> (i32, i32, i32) {
    %c1_i32 = arith.constant 1 : i32
    %0 = arith.subi %arg1, %c1_i32 : i32
    %c0_i32 = arith.constant 0 : i32
    %1 = arith.maxsi %0, %c0_i32 : i32
    %c0_i32_0 = arith.constant 0 : i32
    %c0_i32_1 = arith.constant 0 : i32
    %c0_i32_2 = arith.constant 0 : i32
    return %1, %c0_i32_0, %c0_i32_1 : i32, i32, i32
  }
  func.func @transform_3(%arg0: i32, %arg1: i32) -> (i32, i32, i32) {
    %c0_i32 = arith.constant 0 : i32
    %c0_i32_0 = arith.constant 0 : i32
    %c0_i32_1 = arith.constant 0 : i32
    return %arg1, %c0_i32, %c0_i32_0 : i32, i32, i32
  }
  func.func @transform_4(%arg0: i32, %arg1: i32) -> (i32, i32, i32) {
    %c0_i32 = arith.constant 0 : i32
    %c0_i32_0 = arith.constant 0 : i32
    %c0_i32_1 = arith.constant 0 : i32
    return %arg1, %c0_i32, %c0_i32_0 : i32, i32, i32
  }
  func.func @transform_5(%arg0: i32, %arg1: i32) -> (i32, i32, i32) {
    %c0_i32 = arith.constant 0 : i32
    %c0_i32_0 = arith.constant 0 : i32
    %c0_i32_1 = arith.constant 0 : i32
    return %arg1, %c0_i32, %c0_i32_0 : i32, i32, i32
  }
  func.func @transform_6(%arg0: i32, %arg1: i32) -> (i32, i32, i32) {
    %c0_i32 = arith.constant 0 : i32
    %c0_i32_0 = arith.constant 0 : i32
    %c0_i32_1 = arith.constant 0 : i32
    return %arg1, %c0_i32, %c0_i32_0 : i32, i32, i32
  }
  func.func @transform_7(%arg0: i32, %arg1: i32) -> (i32, i32) {
    %c0_i32 = arith.constant 0 : i32
    %c0_i32_0 = arith.constant 0 : i32
    %c0_i32_1 = arith.constant 0 : i32
    return %c0_i32, %c0_i32_0 : i32, i32
  }
  func.func @transform_8(%arg0: i32, %arg1: i32) -> (i32, i32) {
    %c0_i32 = arith.constant 0 : i32
    %c0_i32_0 = arith.constant 0 : i32
    %c0_i32_1 = arith.constant 0 : i32
    return %c0_i32, %c0_i32_0 : i32, i32
  }
  func.func @transform_9(%arg0: i32, %arg1: i32) -> (i32, i32, i32) {
    %c0_i32 = arith.constant 0 : i32
    %c0_i32_0 = arith.constant 0 : i32
    %c0_i32_1 = arith.constant 0 : i32
    return %arg0, %c0_i32, %c0_i32_0 : i32, i32, i32
  }
}

</mosaic_0001>

<bundles_post_ra>
// kernel: resnet50_caam_forward.1
= control target key start
LH: loop header
LB: loop body
LE: loop exit
PB: predicated region body
PF: predicated region fallthrough
CT: control target
= control target key end

     0   :  { %s3837_s0 = inlined_call_operand.hbm [shape: bf16[2,64,32], index: 0, kind: input, shape index: {}]   ;;  %s3838_s1 = inlined_call_operand.hbm [shape: bf16[3,32,32], index: 1, kind: input, shape index: {}]   ;;  %s3839_s2 = inlined_call_operand.hbm [shape: f32[3,1,32], index: 2, kind: input, shape index: {}]   ;;  %s3840_s3 = inlined_call_operand.hbm [shape: bf16[4,32,8], index: 3, kind: input, shape index: {}]   ;;  %s3841_s4 = inlined_call_operand.hbm [shape: f32[4,1,8], index: 4, kind: input, shape index: {}]   ;;  %s3842_s5 = inlined_call_operand.hbm [shape: bf16[4,8,32], index: 5, kind: input, shape index: {}]   ;;  %s3843_s6 = inlined_call_operand.hbm [shape: f32[4,1,32], index: 6, kind: input, shape index: {}]   ;;  %s3844_s7 = inlined_call_operand.hbm [shape: f32[32,10], index: 7, kind: input, shape index: {}]   ;;  %s3845_s8 = inlined_call_operand.hbm [shape: f32[1,10], index: 8, kind: input, shape index: {}]   ;;  %s3846_s9 = inlined_call_operand.hbm [shape: f32[2,1,10], index: 9, kind: output, shape index: {}]  }
   0x1   :  { %3900 = sst [smem:[#allocation49_spill]] %s3838_s1 }
   0x2   :  { %3901 = sst [smem:[#allocation50_spill]] %s3840_s3 }
   0x3   :  { %3902 = sst [smem:[#allocation51_spill]] %s3842_s5 }
   0x4   :  { %3903 = sst [smem:[#allocation52_spill]] %s3844_s7 }
   0x5   :  { %3904 = sst [smem:[#allocation53_spill]] %s3846_s9 }
   0x6   :  { %14 = vsyncpa [#allocation5], 0 }
   0x7   :  { %15 = vsyncpa [#allocation8], 0 }
   0x8   :  { %17 = vsyncpa [#allocation8 + $0x1], 0 }
   0x9   :  { %18 = vsyncpa [#allocation11], 0 }
   0xa   :  { %20 = vsyncpa [#allocation11 + $0x1], 0 }
   0xb   :  { %21 = vsyncpa [#allocation14], 0 }
   0xc   :  { %23 = vsyncpa [#allocation14 + $0x1], 0 }
   0xd   :  { %24 = vsyncpa [#allocation17], 0 }
   0xe   :  { %25 = vsyncpa [#allocation6], 0  ;;  %s2822_s30 = smov 0   ;;  %s2824_s10 = smov 0  }
   0xf   :  { %s2826_s11 = smov 0   ;;  %s2828_s12 = smov 0  }
  0x10   :  { %s2830_s13 = smov 0   ;;  %s2832_s14 = smov 0  }
  0x11   :  { %s2834_s15 = smov 0   ;;  %s2836_s16 = smov 0  }
  0x12   :  { %s2838_s17 = smov 0  }
  0x13 LB: > { %3905 = sst [smem:[#allocation26_spill]] %s2718_s10  ;;  %s2864_s18 = sadd.s32 4294967295, %s2746_s17   ;;  %s2746_s17 = sphi %s2838_s17, %s31_s17   ;;  %s2742_s16 = sphi %s2836_s16, %s3999_s16   ;;  %s2738_s15 = sphi %s2834_s15, %s3998_s15   ;;  %s2734_s14 = sphi %s2832_s14, %s3997_s14   ;;  %s2730_s13 = sphi %s2830_s13, %s3996_s13   ;;  %s2726_s12 = sphi %s2828_s12, %s3993_s12   ;;  %s2722_s11 = sphi %s2826_s11, %s3992_s11   ;;  %s2718_s10 = sphi %s2824_s10, %s3991_s10   ;;  %s2714_s30 = sphi %s2822_s30, %s3990_s30  }
  0x14   : > { %3906 = sst [smem:[#allocation27_spill]] %s2722_s11  ;;  %p95_p0 = scmp.ne.s32.totalorder %s2730_s13, %s2726_s12 }
  0x15   : > { %3907 = sst [smem:[#allocation28_spill]] %s2730_s13  ;;  %p3847_p1 = scmp.eq.s32.totalorder %s2864_s18, 0 }
  0x16   : > { %3908 = sst [smem:[#allocation29_spill]] %s2738_s15  ;;  %p153_p2 = scmp.ne.s32.totalorder %s2718_s10, %s2714_s30 }
  0x17   : > { %3909 = sst [smem:[#allocation30_spill]] %s2746_s17  ;;  %p1989_p3 = scmp.ge.s32.totalorder %s2746_s17, 1 }
  0x18   : > { %3910 = sst [smem:[#allocation31_spill]] %s2864_s18  ;;  %p310_p4 = scmp.lt.s32.totalorder %s2746_s17, 5 }
  0x19   : > { %p2873_p5 = por %p3847_p1, %p95_p0  ;;  %p2879_p6 = por %p153_p2, %p3847_p1 }
  0x1a   : > { %p2883_p7 = pnand %p1989_p3, %p310_p4  ;;  %s2748_s22 = smov [#allocation16]  }
  0x1b   : > { %s3911_s19 = scalar_select %p2873_p5, 1, 0 }
  0x1c   : > { %s3913_s20 = scalar_select %p2879_p6, 1, 0 }
  0x1d   : > { %3912 = sst [smem:[#allocation32_spill]] %s3911_s19  ;;  %p2212_p8 = pneg %p2883_p7 }
  0x1e   : > { %3914 = sst [smem:[#allocation33_spill]] %s3913_s20  ;;  %s339_s23 = sshll.u32 %s2748_s22, 4  ;;  %s340_s23 = int_to_ptr.vmem [resolvable:$true] %s339_s23 }
  0x1f   : > { %s3915_s21 = scalar_select %p2883_p7, 1, 0 }
  0x20   : > { %p2891_p9 = pnand %p2212_p8, %p3847_p1  ;;  %s3918_s7 = sld [smem:[#allocation52_spill]] }
  0x21   : > { %3916 = sst [smem:[#allocation34_spill]] %s3915_s21 }
  0x22   : > { %s3917_s24 = scalar_select %p2891_p9, 1, 0 }
  0x23   : > { %p2903_p11 = pneg %p2891_p9 }
  0x25   : > { %s3919_s30 = scalar_select %p2903_p11, 1, 0 }
  0x26   : > { %s2362_s27 = scalar_lea.hbm %s3918_s7, 512 }
  0x27   : > { %p2363_p10 = scmp.ne.s32.totalorder %s3918_s7, %s2362_s27  ;;  %p2369_p0 = scmp.lt.u32.totalorder %s2362_s27, %s3918_s7 }
  0x29   : > { %p2365_p12 = pnand %p2903_p11, %p2363_p10 }
  0x2b   : > { %p2366_p13 = pneg %p2365_p12 }
  0x2d   : > { %p2371_p2 = pnand %p2369_p0, %p2366_p13 }
  0x2f   : > { %2374 = shalt.err (!%p2371_p2)
}
  0x30   : > { %s2375_s25 = scalar_lea.vmem %s340_s23, 512  ;;  %p2383_p1 = scmp.lt.s32.totalorder %s340_s23, %s340_s23 }
  0x31   : > { %p2376_p3 = scmp.ne.s32.totalorder %s340_s23, %s2375_s25  ;;  %p2384_p6 = scmp.lt.s32.totalorder %s2375_s25, %s2375_s25 }
  0x33   : > { %p2378_p4 = pnand %p2376_p3, %p2903_p11  ;;  %p2385_p5 = por %p2384_p6, %p2383_p1 }
  0x35   : > { %p2379_p8 = pneg %p2378_p4 }
  0x37   : > { %p2386_p7 = pnand %p2385_p5, %p2379_p8 }
  0x39   : > { %2389 = shalt.err (!%p2386_p7)
}
  0x3a   : > { %s2749_s26 = smov 128   ;;  %s2750_s27 = smov 8  }
  0x3b   : > { %2218 = dma.hbm_to_vmem [thread:$0]  (!%p2891_p9), %s3918_s7, 512, %s340_s23, [#allocation17], %s2749_s26, %s2749_s26, %s2750_s27  }
  0x3c   : > { %s40_s12 = sadd.s32 1, %s2742_s16  ;;  %s1985_s22 = sadd.s32 4294967295, %s2742_s16 }
  0x3d   : > { %p41_p1 = scmp.ge.s32.totalorder %s40_s12, 4  ;;  %p74_p5 = scmp.gt.s32.totalorder %s1985_s22, 0 }
  0x3e   : > { %s82_s25 = sadd.s32 1, %s2734_s14  ;;  %p89_p6 = scmp.ne.s32.totalorder %s2734_s14, %s2730_s13 }
  0x3f   : > { %s4001_s12 = smov (%p41_p1, %s40_s12), 0  ;;  %s4003_s22 = smov (!%p74_p5, %s1985_s22), 0 }
  0x40   : > { %3920 = sst [smem:[#allocation35_spill]] %s4001_s12  ;;  %s1986_s28 = sadd.s32 4294967295, %s4001_s12 }
  0x41   : > { %p77_p7 = scmp.gt.s32.totalorder %s1986_s28, 0  ;;  %p3862_p10 = scmp.eq.s32.totalorder %s2746_s17, 0 }
  0x42   : > { %s137_s23 = ssub.s32 %s2742_s16, %s4001_s12  ;;  %p3861_p2 = scmp.lt.s32.totalorder %s2746_s17, 4 }
  0x43   : > { %s4005_s28 = smov (!%p77_p7, %s1986_s28), 0  ;;  %p2934_p12 = por %p3862_p10, %p89_p6 }
  0x44   : > { %p2938_p13 = scmp.eq.s32.totalorder %s137_s23, 0  ;;  %s79_s29 = ssub.s32 %s4003_s22, %s4005_s28 }
  0x45   : > { %p80_p0 = scmp.eq.s32.totalorder %s79_s29, 0  ;;  %s2945_s7 = sand.u32 1, %s2746_s17  }
  0x46   : > { %s3863_s9 = sand.u32 1, %s2734_s14   ;;  %s2049_s20 = sshll.u32 %s4003_s22, 8 }
  0x47   : > { %s2949_s12 = scalar_select %p80_p0, %s2734_s14, %s82_s25  }
  0x48   : > { %s1994_s15 = sshll.u32 %s3863_s9, 4  ;;  %s3924_s1 = sld [smem:[#allocation49_spill]] }
  0x49   : > { %3923 = sst [smem:[#allocation36_spill]] %s2949_s12  ;;  %s368_s28 = scalar_lea.vmem [#allocation7], %s1994_s15 }
  0x4a   : > { %s378_s23 = sshll.u32 %s368_s28, 4  ;;  %p2965_p3 = pnand %p3861_p2, %p2934_p12  ;;  %s2959_s23 = int_to_ptr.vmem [resolvable:$true] %s378_s23 }
  0x4b   : > { %s3869_s29 = scalar_lea.sflag [#allocation8], %s2945_s7 }
  0x4c   : > { %s3925_s25 = scalar_select %p2965_p3, 1, 0 }
  0x4d   : > { %p3874_p8 = pneg %p2965_p3 }
  0x4e   : > { %s2957_s18 = scalar_lea.hbm %s3924_s1, %s2049_s20  ;;  %s2395_s20 = scalar_lea.hbm %s3924_s1, 768 }
  0x4f   : > { %s2390_s13 = scalar_lea.hbm %s2957_s18, 256  ;;  %p2396_p6 = scmp.lt.u32.totalorder %s2957_s18, %s3924_s1 }
  0x50   : > { %p2391_p4 = scmp.ne.s32.totalorder %s2957_s18, %s2390_s13  ;;  %p2397_p7 = scmp.lt.u32.totalorder %s2395_s20, %s2390_s13 }
  0x51   : > { %p2399_p0 = scmp.lt.u32.totalorder %s2390_s13, %s2957_s18 }
  0x52   : > { %p2393_p1 = pnand %p3874_p8, %p2391_p4  ;;  %p2398_p12 = por %p2397_p7, %p2396_p6 }
  0x54   : > { %p2394_p5 = pneg %p2393_p1  ;;  %p2400_p2 = por %p2399_p0, %p2398_p12 }
  0x56   : > { %p2401_p10 = pnand %p2400_p2, %p2394_p5 }
  0x58   : > { %2404 = shalt.err (!%p2401_p10)
}
  0x59   : > { %s2405_s9 = scalar_lea.vmem %s2959_s23, 256  ;;  %s2751_s15 = smov [#allocation7]  }
  0x5a   : > { %p2406_p4 = scmp.ne.s32.totalorder %s2959_s23, %s2405_s9  ;;  %s2410_s19 = sshll.u32 %s2751_s15, 4  ;;  %s2411_s19 = int_to_ptr.vmem [resolvable:$false] %s2410_s19 }
  0x5b   : > { %s2412_s26 = scalar_lea.vmem %s2411_s19, 512  ;;  %p2413_p11 = scmp.lt.s32.totalorder %s2959_s23, %s2411_s19 }
  0x5c   : > { %p2408_p1 = pnand %p2406_p4, %p3874_p8  ;;  %p2414_p6 = scmp.lt.s32.totalorder %s2412_s26, %s2405_s9 }
  0x5e   : > { %p2409_p9 = pneg %p2408_p1  ;;  %p2415_p7 = por %p2414_p6, %p2413_p11 }
  0x60   : > { %p2416_p12 = pnand %p2415_p7, %p2409_p9 }
  0x62   : > { %2419 = shalt.err (!%p2416_p12)
}
  0x63   : > { %s3870_s13 = smov 64   ;;  %s3872_s20 = smov 4  }
  0x64   : > { %2225 = dma.hbm_to_vmem [thread:$0]  (!%p2965_p3), %s2957_s18, 256, %s2959_s23, %s3869_s29, %s3870_s13, %s3870_s13, %s3872_s20  }
  0x65   : > { %s140_s9 = sadd.s32 1, %s2722_s11  ;;  %p147_p9 = scmp.ne.s32.totalorder %s2722_s11, %s2718_s10 }
  0x66   : > { %s3006_s28 = scalar_select %p2938_p13, %s2722_s11, %s140_s9  }
  0x67   : > { %p3927_p11 = scmp.eq.s32.totalorder %s2746_s17, 0  ;;  %s3011_s15 = sand.u32 1, %s2722_s11  }
  0x68   : > { %3926 = sst [smem:[#allocation37_spill]] %s3006_s28  ;;  %s2000_s19 = sshll.u32 %s3011_s15, 4 }
  0x69   : > { %p149_p10 = por %p147_p9, %p3927_p11  ;;  %s2050_s26 = sshll.u32 %s2742_s16, 8 }
  0x6a   : > { %s3928_s3 = sld [smem:[#allocation50_spill]]  ;;  %s412_s18 = scalar_lea.vmem [#allocation10], %s2000_s19 }
  0x6b   : > { %s419_s27 = sshll.u32 %s412_s18, 4  ;;  %p3929_p13 = scmp.lt.s32.totalorder %s2746_s17, 4  ;;  %s3026_s27 = int_to_ptr.vmem [resolvable:$true] %s419_s27 }
  0x6c   : > { %s3879_s29 = scalar_lea.sflag [#allocation11], %s2945_s7 }
  0x6d   : > { %p3022_p2 = pnand %p3929_p13, %p149_p10 }
  0x6f   : > { %s3930_s23 = scalar_select %p3022_p2, 1, 0 }
  0x70   : > { %s3018_s21 = scalar_lea.hbm %s3928_s3, %s2050_s26  ;;  %p3034_p0 = pneg %p3022_p2 }
  0x71   : > { %s2420_s13 = scalar_lea.hbm %s3018_s21, 256  ;;  %s2425_s26 = scalar_lea.hbm %s3928_s3, 1024 }
  0x72   : > { %p2421_p5 = scmp.ne.s32.totalorder %s3018_s21, %s2420_s13  ;;  %p2426_p6 = scmp.lt.u32.totalorder %s3018_s21, %s3928_s3 }
  0x73   : > { %s3931_s1 = scalar_select %p3034_p0, 1, 0 }
  0x74   : > { %p2423_p4 = pnand %p3034_p0, %p2421_p5  ;;  %p2427_p7 = scmp.lt.u32.totalorder %s2425_s26, %s2420_s13 }
  0x75   : > { %p2429_p9 = scmp.lt.u32.totalorder %s2420_s13, %s3018_s21 }
  0x76   : > { %p2424_p1 = pneg %p2423_p4  ;;  %p2428_p12 = por %p2427_p7, %p2426_p6 }
  0x78   : > { %p2430_p11 = por %p2429_p9, %p2428_p12 }
  0x7a   : > { %p2431_p10 = pnand %p2430_p11, %p2424_p1 }
  0x7c   : > { %2434 = shalt.err (!%p2431_p10)
}
  0x7d   : > { %s2435_s9 = scalar_lea.vmem %s3026_s27, 256  ;;  %s2754_s12 = smov [#allocation10]  }
  0x7e   : > { %p2436_p13 = scmp.ne.s32.totalorder %s3026_s27, %s2435_s9  ;;  %s2440_s19 = sshll.u32 %s2754_s12, 4  ;;  %s2441_s19 = int_to_ptr.vmem [resolvable:$false] %s2440_s19 }
  0x7f   : > { %s2442_s20 = scalar_lea.vmem %s2441_s19, 512  ;;  %p2443_p8 = scmp.lt.s32.totalorder %s3026_s27, %s2441_s19 }
  0x80   : > { %p2438_p5 = pnand %p2436_p13, %p3034_p0  ;;  %p2444_p3 = scmp.lt.s32.totalorder %s2442_s20, %s2435_s9 }
  0x82   : > { %p2439_p4 = pneg %p2438_p5  ;;  %p2445_p6 = por %p2444_p3, %p2443_p8 }
  0x84   : > { %p2446_p7 = pnand %p2445_p6, %p2439_p4 }
  0x86   : > { %2449 = shalt.err (!%p2446_p7)
}
  0x87   : > { %s3932_s13 = smov 4   ;;  %s3933_s26 = smov 64  }
  0x88   : > { %2231 = dma.hbm_to_vmem [thread:$0]  (!%p3022_p2), %s3018_s21, 256, %s3026_s27, %s3879_s29, %s3933_s26, %s3933_s26, %s3932_s13  }
  0x89   : > { %s2005_s18 = sshll.u32 %s2742_s16, 6  ;;  %s3934_s5 = sld [smem:[#allocation51_spill]] }
  0x8a   : > { %s3935_s20 = sshll.u32 %s3011_s15, 2  ;;  %s447_s11 = scalar_lea.sflag [#allocation14], %s2945_s7 }
  0x8b   : > { %s450_s3 = scalar_lea.vmem [#allocation13], %s3935_s20 }
  0x8c   : > { %s457_s28 = sshll.u32 %s450_s3, 4  ;;  %s458_s28 = int_to_ptr.vmem [resolvable:$true] %s457_s28 }
  0x8f   : > { %s3066_s19 = scalar_lea.hbm %s3934_s5, %s2005_s18  ;;  %s2455_s12 = scalar_lea.hbm %s3934_s5, 256 }
  0x90   : > { %s2450_s17 = scalar_lea.hbm %s3066_s19, 64  ;;  %p2456_p12 = scmp.lt.u32.totalorder %s3066_s19, %s3934_s5 }
  0x91   : > { %p2451_p3 = scmp.ne.s32.totalorder %s3066_s19, %s2450_s17  ;;  %p2457_p9 = scmp.lt.u32.totalorder %s2455_s12, %s2450_s17 }
  0x92   : > { %p2459_p10 = scmp.lt.u32.totalorder %s2450_s17, %s3066_s19 }
  0x93   : > { %p2453_p8 = pnand %p2451_p3, %p3034_p0  ;;  %p2458_p11 = por %p2457_p9, %p2456_p12 }
  0x95   : > { %p2454_p1 = pneg %p2453_p8  ;;  %p2460_p13 = por %p2459_p10, %p2458_p11 }
  0x97   : > { %p2461_p5 = pnand %p2460_p13, %p2454_p1 }
  0x99   : > { %2464 = shalt.err (!%p2461_p5)
}
  0x9a   : > { %s2465_s3 = scalar_lea.vmem %s458_s28, 64  ;;  %s2755_s20 = smov [#allocation13]  }
  0x9b   : > { %p2466_p4 = scmp.ne.s32.totalorder %s458_s28, %s2465_s3  ;;  %s2470_s29 = sshll.u32 %s2755_s20, 4  ;;  %s2471_s29 = int_to_ptr.vmem [resolvable:$false] %s2470_s29 }
  0x9c   : > { %s2472_s21 = scalar_lea.vmem %s2471_s29, 128  ;;  %p2473_p3 = scmp.lt.s32.totalorder %s458_s28, %s2471_s29 }
  0x9d   : > { %p2468_p6 = pnand %p2466_p4, %p3034_p0  ;;  %p2474_p8 = scmp.lt.s32.totalorder %s2472_s21, %s2465_s3 }
  0x9f   : > { %p2469_p7 = pneg %p2468_p6  ;;  %p2475_p2 = por %p2474_p8, %p2473_p3 }
  0xa1   : > { %p2476_p9 = pnand %p2475_p2, %p2469_p7 }
  0xa3   : > { %2479 = shalt.err (!%p2476_p9)
}
  0xa4   : > { %p3936_p12 = scmp.ne.s32.totalorder %s3930_s23, 0  ;;  %s2756_s17 = smov [#allocation4]  }
  0xa5   : > { %s326_s27 = sshll.u32 %s2756_s17, 4  ;;  %s2757_s12 = smov [#allocation18]   ;;  %s327_s27 = int_to_ptr.vmem [resolvable:$true] %s326_s27 }
  0xa6   : > { %2237 = dma.hbm_to_vmem [thread:$0]  (!%p3936_p12), %s3066_s19, 64, %s458_s28, %s447_s11  }
  0xa7   : > { %s353_s18 = sshll.u32 %s2757_s12, 4  ;;  %s2480_s29 = scalar_lea.hbm %s3837_s0, 1024  ;;  %s354_s18 = int_to_ptr.vmem [resolvable:$true] %s353_s18 }
  0xa8   : > { %p2481_p2 = scmp.ne.s32.totalorder %s3837_s0, %s2480_s29  ;;  %p3937_p1 = scmp.ne.s32.totalorder %s3919_s30, 0 }
  0xa9   : > { %p2487_p13 = scmp.lt.u32.totalorder %s2480_s29, %s3837_s0 }
  0xaa   : > { %p2483_p11 = pnand %p2481_p2, %p3937_p1 }
  0xac   : > { %p2484_p10 = pneg %p2483_p11 }
  0xae   : > { %p2489_p5 = pnand %p2487_p13, %p2484_p10 }
  0xb0   : > { %2492 = shalt.err (!%p2489_p5)
}
  0xb1   : > { %s2493_s28 = scalar_lea.vmem %s327_s27, 1024  ;;  %p2501_p3 = scmp.lt.s32.totalorder %s327_s27, %s327_s27 }
  0xb2   : > { %p2494_p4 = scmp.ne.s32.totalorder %s327_s27, %s2493_s28  ;;  %p2502_p8 = scmp.lt.s32.totalorder %s2493_s28, %s2493_s28 }
  0xb4   : > { %p2496_p6 = pnand %p2494_p4, %p3937_p1  ;;  %p2503_p9 = por %p2502_p8, %p2501_p3 }
  0xb6   : > { %p2497_p7 = pneg %p2496_p6 }
  0xb8   : > { %p2504_p12 = pnand %p2503_p9, %p2497_p7 }
  0xba   : > { %2507 = shalt.err (!%p2504_p12)
}
  0xbb   : > { %p3938_p2 = scmp.ne.s32.totalorder %s3917_s24, 0  ;;  %s2508_s12 = scalar_lea.hbm %s3845_s8, 16 }
  0xbc   : > { %p2509_p11 = scmp.ne.s32.totalorder %s3845_s8, %s2508_s12  ;;  %p2515_p13 = scmp.lt.u32.totalorder %s2508_s12, %s3845_s8 }
  0xbd   : > { %2215 = dma.hbm_to_vmem [thread:$0]  (!%p3938_p2), %s3837_s0, 1024, %s327_s27, [#allocation5], %s3933_s26, %s3933_s26, %s3932_s13  }
  0xbe   : > { %p2511_p12 = pnand %p2509_p11, %p3937_p1 }
  0xc0   : > { %p2512_p10 = pneg %p2511_p12 }
  0xc2   : > { %p2517_p5 = pnand %p2515_p13, %p2512_p10 }
  0xc4   : > { %2520 = shalt.err (!%p2517_p5)
}
  0xc5   : > { %s2521_s21 = scalar_lea.vmem %s354_s18, 16  ;;  %s2528_s13 = scalar_lea.vmem %s354_s18, 32 }
  0xc6   : > { %p2522_p4 = scmp.ne.s32.totalorder %s354_s18, %s2521_s21  ;;  %p2529_p3 = scmp.lt.s32.totalorder %s354_s18, %s354_s18 }
  0xc7   : > { %p2530_p8 = scmp.lt.s32.totalorder %s2528_s13, %s2521_s21 }
  0xc8   : > { %p2524_p6 = pnand %p2522_p4, %p3937_p1 }
  0xc9   : > { %p2531_p9 = por %p2530_p8, %p2529_p3 }
  0xca   : > { %p2525_p7 = pneg %p2524_p6 }
  0xcc   : > { %p2532_p0 = pnand %p2531_p9, %p2525_p7 }
  0xce   : > { %2535 = shalt.err (!%p2532_p0)
}
  0xcf   : > { %2221 = dma.hbm_to_vmem [thread:$0]  (!%p3938_p2), %s3845_s8, 16, %s354_s18, [#allocation17]  }
  0xd0   : > { %s1999_s28 = sshll.u32 %s4003_s22, 4  ;;  %s3939_s5 = sand.u32 1, %s2734_s14  }
  0xd1   : > { %s391_s30 = scalar_lea.vmem [#allocation9], %s3939_s5  ;;  %s399_s12 = scalar_lea.hbm %s3839_s2, %s1999_s28 }
  0xd2   : > { %s401_s10 = sshll.u32 %s391_s30, 4  ;;  %s2536_s9 = scalar_lea.hbm %s399_s12, 16  ;;  %s402_s10 = int_to_ptr.vmem [resolvable:$true] %s401_s10 }
  0xd3   : > { %p2537_p0 = scmp.ne.s32.totalorder %s399_s12, %s2536_s9  ;;  %p3940_p1 = scmp.ne.s32.totalorder %s3925_s25, 0 }
  0xd4   : > { %s2541_s29 = scalar_lea.hbm %s3839_s2, 48  ;;  %p2542_p2 = scmp.lt.u32.totalorder %s399_s12, %s3839_s2 }
  0xd5   : > { %p3941_p11 = pneg %p3940_p1  ;;  %p2543_p13 = scmp.lt.u32.totalorder %s2541_s29, %s2536_s9 }
  0xd6   : > { %p2545_p4 = scmp.lt.u32.totalorder %s2536_s9, %s399_s12 }
  0xd7   : > { %p2539_p12 = pnand %p2537_p0, %p3941_p11  ;;  %p2544_p5 = por %p2543_p13, %p2542_p2 }
  0xd9   : > { %p2540_p10 = pneg %p2539_p12  ;;  %p2546_p6 = por %p2545_p4, %p2544_p5 }
  0xdb   : > { %p2547_p7 = pnand %p2546_p6, %p2540_p10 }
  0xdd   : > { %2550 = shalt.err (!%p2547_p7)
}
  0xde   : > { %s2551_s3 = scalar_lea.vmem %s402_s10, 16  ;;  %p3942_p8 = pmov %p3941_p11 }
  0xdf   : > { %p2552_p3 = scmp.ne.s32.totalorder %s402_s10, %s2551_s3  ;;  %s2758_s21 = smov [#allocation9]  }
  0xe0   : > { %s2556_s13 = sshll.u32 %s2758_s21, 4  ;;  %s2557_s13 = int_to_ptr.vmem [resolvable:$false] %s2556_s13 }
  0xe1   : > { %p2554_p9 = pnand %p2552_p3, %p3942_p8  ;;  %s2558_s26 = scalar_lea.vmem %s2557_s13, 32 }
  0xe2   : > { %p2559_p11 = scmp.lt.s32.totalorder %s402_s10, %s2557_s13  ;;  %p2560_p12 = scmp.lt.s32.totalorder %s2558_s26, %s2551_s3 }
  0xe3   : > { %p2555_p0 = pneg %p2554_p9 }
  0xe4   : > { %p2561_p2 = por %p2560_p12, %p2559_p11 }
  0xe6   : > { %p2562_p13 = pnand %p2561_p2, %p2555_p0 }
  0xe8   : > { %2565 = shalt.err (!%p2562_p13)
}
  0xe9   : > { %s3943_s27 = scalar_lea.sflag [#allocation8], %s2945_s7  ;;  %s2003_s28 = sshll.u32 %s2742_s16, 4 }
  0xea   : > { %2228 = dma.hbm_to_vmem [thread:$0]  (!%p3940_p1), %s399_s12, 16, %s402_s10, %s3943_s27  }
  0xeb   : > { %s3157_s19 = scalar_lea.hbm %s3841_s4, %s2003_s28  ;;  %s432_s17 = scalar_lea.vmem [#allocation12], %s3011_s15 }
  0xec   : > { %s439_s25 = sshll.u32 %s432_s17, 4  ;;  %s2566_s9 = scalar_lea.hbm %s3157_s19, 16  ;;  %s440_s25 = int_to_ptr.vmem [resolvable:$true] %s439_s25 }
  0xed   : > { %p2567_p10 = scmp.ne.s32.totalorder %s3157_s19, %s2566_s9  ;;  %p3944_p5 = scmp.ne.s32.totalorder %s3931_s1, 0 }
  0xee   : > { %s2571_s24 = scalar_lea.hbm %s3841_s4, 64  ;;  %p2572_p1 = scmp.lt.u32.totalorder %s3157_s19, %s3841_s4 }
  0xef   : > { %p2569_p4 = pnand %p2567_p10, %p3944_p5  ;;  %p2573_p7 = scmp.lt.u32.totalorder %s2571_s24, %s2566_s9 }
  0xf0   : > { %p2575_p8 = scmp.lt.u32.totalorder %s2566_s9, %s3157_s19 }
  0xf1   : > { %p2570_p6 = pneg %p2569_p4  ;;  %p2574_p3 = por %p2573_p7, %p2572_p1 }
  0xf3   : > { %p2576_p9 = por %p2575_p8, %p2574_p3 }
  0xf5   : > { %p2577_p0 = pnand %p2576_p9, %p2570_p6 }
  0xf7   : > { %2580 = shalt.err (!%p2577_p0)
}
  0xf8   : > { %s2581_s18 = scalar_lea.vmem %s440_s25, 16  ;;  %s2759_s22 = smov [#allocation12]  }
  0xf9   : > { %p2582_p11 = scmp.ne.s32.totalorder %s440_s25, %s2581_s18  ;;  %s2586_s3 = sshll.u32 %s2759_s22, 4  ;;  %s2587_s3 = int_to_ptr.vmem [resolvable:$false] %s2586_s3 }
  0xfa   : > { %s2588_s21 = scalar_lea.vmem %s2587_s3, 32  ;;  %p2589_p13 = scmp.lt.s32.totalorder %s440_s25, %s2587_s3 }
  0xfb   : > { %p2584_p12 = pnand %p2582_p11, %p3944_p5  ;;  %p2590_p10 = scmp.lt.s32.totalorder %s2588_s21, %s2581_s18 }
  0xfd   : > { %p2585_p2 = pneg %p2584_p12  ;;  %p2591_p4 = por %p2590_p10, %p2589_p13 }
  0xff   : > { %p2592_p1 = pnand %p2591_p4, %p2585_p2 }
 0x101   : > { %2595 = shalt.err (!%p2592_p1)
}
 0x102   : > { %p3945_p7 = scmp.ne.s32.totalorder %s3930_s23, 0  ;;  %s3946_s13 = scalar_lea.sflag [#allocation11], %s2945_s7 }
 0x103   : > { %s3184_s5 = scalar_lea.hbm %s3843_s6, %s2003_s28  ;;  %s467_s30 = scalar_lea.vmem [#allocation15], %s3011_s15 }
 0x104   : > { %2234 = dma.hbm_to_vmem [thread:$0]  (!%p3945_p7), %s3157_s19, 16, %s440_s25, %s3946_s13  }
 0x105   : > { %s474_s17 = sshll.u32 %s467_s30, 4  ;;  %s2596_s9 = scalar_lea.hbm %s3184_s5, 16  ;;  %s475_s17 = int_to_ptr.vmem [resolvable:$true] %s474_s17 }
 0x106   : > { %p2597_p6 = scmp.ne.s32.totalorder %s3184_s5, %s2596_s9  ;;  %s2601_s25 = scalar_lea.hbm %s3843_s6, 64 }
 0x107   : > { %p2602_p9 = scmp.lt.u32.totalorder %s3184_s5, %s3843_s6  ;;  %p2603_p0 = scmp.lt.u32.totalorder %s2601_s25, %s2596_s9 }
 0x108   : > { %p2599_p3 = pnand %p2597_p6, %p3944_p5  ;;  %p2605_p12 = scmp.lt.u32.totalorder %s2596_s9, %s3184_s5 }
 0x109   : > { %p2604_p11 = por %p2603_p0, %p2602_p9 }
 0x10a   : > { %p2600_p8 = pneg %p2599_p3 }
 0x10b   : > { %p2606_p2 = por %p2605_p12, %p2604_p11 }
 0x10d   : > { %p2607_p13 = pnand %p2606_p2, %p2600_p8 }
 0x10f   : > { %2610 = shalt.err (!%p2607_p13)
}
 0x110   : > { %s2611_s15 = scalar_lea.vmem %s475_s17, 16  ;;  %s2760_s28 = smov [#allocation15]  }
 0x111   : > { %p2612_p10 = scmp.ne.s32.totalorder %s475_s17, %s2611_s15  ;;  %s2616_s20 = sshll.u32 %s2760_s28, 4  ;;  %s2617_s20 = int_to_ptr.vmem [resolvable:$false] %s2616_s20 }
 0x112   : > { %s2618_s29 = scalar_lea.vmem %s2617_s20, 32  ;;  %p2619_p6 = scmp.lt.s32.totalorder %s475_s17, %s2617_s20 }
 0x113   : > { %p2614_p4 = pnand %p2612_p10, %p3944_p5  ;;  %p2620_p3 = scmp.lt.s32.totalorder %s2618_s29, %s2611_s15 }
 0x115   : > { %p2615_p1 = pneg %p2614_p4  ;;  %p2621_p7 = por %p2620_p3, %p2619_p6 }
 0x117   : > { %p2622_p0 = pnand %p2621_p7, %p2615_p1 }
 0x119   : > { %2625 = shalt.err (!%p2622_p0)
}
 0x11a   : > { %p3947_p9 = scmp.ne.s32.totalorder %s3930_s23, 0  ;;  %s3948_s18 = sld [smem:[#allocation34_spill]] }
 0x11c   : > { %2240 = dma.hbm_to_vmem [thread:$0]  (!%p3947_p9), %s3184_s5, 16, %s475_s17, %s447_s11  }
 0x120   : > { %p3949_p8 = scmp.ne.s32.totalorder %s3948_s18, 0 }
 0x121   : > { %s3950_s1 = sld [smem:[#allocation31_spill]] (!%p3949_p8) }
 0x122   : > { %483 = sbr.rel (%p3949_p8) target bundleno = 1939 (0x793), region = 56 }
 0x127   : > { %p3951_p5 = scmp.eq.s32.totalorder (!%p3949_p8), %s3950_s1, 0 }
 0x129   : > { %2689 = dma.done.wait (%p3951_p5), [#allocation5], 1024   ;;  %p3952_p11 = pmov %p3951_p5 }
 0x12a   : > { %s3953_s22 = sld [smem:[#allocation28_spill]]  ;;  %s3954_s3 = sld [smem:[#allocation32_spill]] }
 0x12b   : > { %2691 = vsyncadd (%p3952_p11), [#allocation5], 4294966272  ;;  %s489_s21 = sand.u32 1, %s3950_s1  }
 0x12c   : > { %s490_s7 = scalar_lea.sflag [#allocation8], %s489_s21 }
 0x130   : > { %s491_s13 = sand.u32 1, %s3953_s22   ;;  %p3955_p7 = scmp.ne.s32.totalorder %s3954_s3, 0 }
 0x131   : > { %s3214_s26 = sshll.u32 %s491_s13, 4 }
 0x132   : > { %s493_s23 = scalar_lea.vmem [#allocation7], %s3214_s26 }
 0x133   : > { %2693 = dma.done.wait (%p3955_p7), %s490_s7, 272  }
 0x134   : > { %2695 = vsyncadd (%p3955_p7), %s490_s7, 4294967024  ;;  %s3956_s11 = sld [smem:[#allocation26_spill]]  ;;  %s3957_s27 = sld [smem:[#allocation33_spill]] }
 0x135   : > { %s3225_s17 = scalar_lea.vmem [#allocation9], %s491_s13  ;;  %s507_s9 = scalar_lea.sflag [#allocation11], %s489_s21 }
 0x13a   : > { %s3222_s5 = sand.u32 1, %s3956_s11   ;;  %p3958_p12 = scmp.ne.s32.totalorder %s3957_s27, 0 }
 0x13b   : > { %s2010_s30 = sshll.u32 %s3222_s5, 4 }
 0x13c   : > { %s3227_s10 = scalar_lea.vmem [#allocation10], %s2010_s30 }
 0x13d   : > { %2697 = dma.done.wait (%p3958_p12), %s507_s9, 272  }
 0x13e   : > { %2699 = vsyncadd (%p3958_p12), %s507_s9, 4294967024  ;;  %s2011_s19 = sshll.u32 %s3222_s5, 2  ;;  %s518_s25 = scalar_lea.vmem [#allocation12], %s3222_s5 }
 0x13f   : > { %s524_s12 = scalar_lea.sflag [#allocation14], %s489_s21  ;;  %s3235_s24 = scalar_lea.vmem [#allocation13], %s2011_s19 }
 0x140   : > { %2701 = dma.done.wait (%p3958_p12), %s524_s12, 80  }
 0x141   : > { %2703 = vsyncadd (%p3958_p12), %s524_s12, 4294967216  ;;  %s535_s15 = scalar_lea.vmem [#allocation15], %s3222_s5  ;;  %p3959_p2 = pmov %p3951_p5 }
 0x143   : > { %2705 = dma.done.wait (%p3959_p2), [#allocation17], 528   ;;  %p3960_p13 = pmov %p3959_p2 }
 0x144   : > { %s3961_s28 = sld [smem:[#allocation29_spill]] }
 0x145   : > { %2707 = vsyncadd (%p3960_p13), [#allocation17], 4294966768 }
 0x14a   : > { %p2014_p10 = scmp.ne.s32.totalorder %s3961_s28, 0 }
 0x14b   : > { %v2340_v0 = vld [vmem:[%s3227_s10] sm:$0xff] (!%p2014_p10)   ;;  %v2761_v1 = vmov (!%p2014_p10), 0.0   ;;  %v2341_v2 = vld [vmem:[%s3227_s10 + $0x8] sm:$0xff] (!%p2014_p10)   ;;  %vm2762_vm0 = vmmov (!%p2014_p10), 0   ;;  %vm640_vm1 = vcmask (!%p2014_p10), 261120   ;;  %vm815_vm3 = vcmask (!%p2014_p10), 1043456  }
 0x14c   : > { %607 = sbr.rel (%p2014_p10) target bundleno = 861 (0x35d), region = 96  ;;  %2115 = vmatprep.subr.bf16.mxu0 (!%p2014_p10), %v2761_v1  ;;  %2123 = vmatprep.subr.bf16.mxu1 (!%p2014_p10), %v2761_v1  ;;  %v2052_v3 = vld [vmem:[#allocation4] sm:$0xff] (!%p2014_p10)   ;;  %v2083_v4 = vld [vmem:[#allocation4 + $0x8] sm:$0xff] (!%p2014_p10)   ;;  %v2084_v5 = vld [vmem:[#allocation4 + $0x10] sm:$0xff] (!%p2014_p10)   ;;  %vm811_vm4 = vcmask (!%p2014_p10), 64512  }
 0x14d   : > { %2116 = vmatpush3.bf16.msra.mxu0 (!%p2014_p10), %v2340_v0  ;;  %2119 = vmatprep.mubr.msk.bf16.mxu0 (!%p2014_p10), %vm2762_vm0, %v2761_v1  ;;  %v3249_v6 = vunpack.c.l.bf16 (!%p2014_p10), %v2052_v3  ;;  %v3251_v7 = vunpack.c.h.bf16 (!%p2014_p10), %v2052_v3  ;;  %v3253_v8 = vunpack.c.l.bf16 (!%p2014_p10), %v2083_v4  ;;  %v3255_v9 = vunpack.c.h.bf16 (!%p2014_p10), %v2083_v4  ;;  %v2085_v10 = vld [vmem:[#allocation4 + $0x18] sm:$0xff] (!%p2014_p10)   ;;  %v2086_v11 = vld [vmem:[#allocation4 + $0x20] sm:$0xff] (!%p2014_p10)   ;;  %v2087_v12 = vld [vmem:[#allocation4 + $0x28] sm:$0xff] (!%p2014_p10)  }
 0x14e   : > { %2117 = vmatprep.subr.bf16.mxu0 (!%p2014_p10), %v2761_v1  ;;  %2125 = vmatprep.mubr.msk.bf16.mxu1 (!%p2014_p10), %vm2762_vm0, %v2761_v1  ;;  %v3257_v13 = vunpack.c.l.bf16 (!%p2014_p10), %v2084_v5  ;;  %v3259_v14 = vunpack.c.h.bf16 (!%p2014_p10), %v2084_v5  ;;  %v3261_v15 = vunpack.c.l.bf16 (!%p2014_p10), %v2085_v10  ;;  %v3263_v16 = vunpack.c.h.bf16 (!%p2014_p10), %v2085_v10  ;;  %v2088_v17 = vld [vmem:[#allocation4 + $0x30] sm:$0xff] (!%p2014_p10)   ;;  %v2089_v18 = vld [vmem:[#allocation4 + $0x38] sm:$0xff] (!%p2014_p10)  }
 0x14f   : > { %v3265_v19 = vunpack.c.l.bf16 (!%p2014_p10), %v2086_v11  ;;  %v3267_v20 = vunpack.c.h.bf16 (!%p2014_p10), %v2086_v11  ;;  %v3269_v21 = vunpack.c.l.bf16 (!%p2014_p10), %v2087_v12  ;;  %v3271_v22 = vunpack.c.h.bf16 (!%p2014_p10), %v2087_v12 }
 0x150   : > { %v3273_v23 = vunpack.c.l.bf16 (!%p2014_p10), %v2088_v17  ;;  %v3275_v24 = vunpack.c.h.bf16 (!%p2014_p10), %v2088_v17  ;;  %v3277_v25 = vunpack.c.l.bf16 (!%p2014_p10), %v2089_v18  ;;  %v3279_v26 = vunpack.c.h.bf16 (!%p2014_p10), %v2089_v18 }
 0x151   : > { %2118 = vmatpush3.bf16.msra.mxu0 (!%p2014_p10), %v2341_v2  ;;  %v641_v27 = vsel (!%p2014_p10), %vm640_vm1, %v3249_v6, 0.0  ;;  %v642_v28 = vsel (!%p2014_p10), %vm640_vm1, %v3251_v7, 0.0  ;;  %v644_v29 = vsel (!%p2014_p10), %vm640_vm1, %v3253_v8, 0.0  ;;  %v646_v30 = vsel (!%p2014_p10), %vm640_vm1, %v3255_v9, 0.0 }
 0x152   : > { %v643_v31 = vadd.f32 (!%p2014_p10), %v642_v28, %v641_v27  ;;  %v648_v32 = vsel (!%p2014_p10), %vm640_vm1, %v3257_v13, 0.0  ;;  %v650_v33 = vsel (!%p2014_p10), %vm640_vm1, %v3259_v14, 0.0  ;;  %v652_v34 = vsel (!%p2014_p10), %vm640_vm1, %v3261_v15, 0.0 }
 0x153   : > { %v654_v35 = vsel %vm640_vm1, %v3263_v16, 0.0  ;;  %v662_v36 = vsel %vm640_vm1, %v3265_v19, 0.0  ;;  %v663_v37 = vsel %vm640_vm1, %v3267_v20, 0.0  ;;  %v665_v38 = vsel %vm640_vm1, %v3269_v21, 0.0 }
 0x154   : > { %v645_v39 = vadd.f32 %v644_v29, %v643_v31  ;;  %v664_v40 = vadd.f32 %v663_v37, %v662_v36  ;;  %v667_v41 = vsel %vm640_vm1, %v3271_v22, 0.0  ;;  %v669_v42 = vsel %vm640_vm1, %v3273_v23, 0.0 }
 0x155   : > { %v671_v43 = vsel %vm640_vm1, %v3275_v24, 0.0  ;;  %v673_v44 = vsel %vm640_vm1, %v3277_v25, 0.0  ;;  %v675_v45 = vsel %vm640_vm1, %v3279_v26, 0.0  ;;  %v685_v46 = vsel %vm640_vm1, %v3249_v6, -inf }
 0x156   : > { %v647_v47 = vadd.f32 %v646_v30, %v645_v39  ;;  %v666_v48 = vadd.f32 %v665_v38, %v664_v40  ;;  %v686_v49 = vsel %vm640_vm1, %v3251_v7, -inf  ;;  %v687_v50 = vsel %vm640_vm1, %v3253_v8, -inf }
 0x157   : > { %v688_v51 = vmax.f32 %v685_v46, %v687_v50  ;;  %v689_v52 = vsel %vm640_vm1, %v3255_v9, -inf  ;;  %v691_v53 = vsel %vm640_vm1, %v3257_v13, -inf  ;;  %v693_v54 = vsel %vm640_vm1, %v3259_v14, -inf }
 0x158   : > { %v649_v55 = vadd.f32 %v648_v32, %v647_v47  ;;  %v668_v56 = vadd.f32 %v667_v41, %v666_v48  ;;  %v690_v57 = vmax.f32 %v686_v49, %v689_v52  ;;  %v695_v58 = vsel %vm640_vm1, %v3261_v15, -inf }
 0x159   : > { %v692_v59 = vmax.f32 %v688_v51, %v691_v53  ;;  %v697_v60 = vsel %vm640_vm1, %v3263_v16, -inf  ;;  %v706_v61 = vsel %vm640_vm1, %v3265_v19, -inf  ;;  %v707_v62 = vsel %vm640_vm1, %v3267_v20, -inf }
 0x15a   : > { %v651_v63 = vadd.f32 %v650_v33, %v649_v55  ;;  %v670_v0 = vadd.f32 %v669_v42, %v668_v56  ;;  %v694_v1 = vmax.f32 %v690_v57, %v693_v54  ;;  %v708_v2 = vsel %vm640_vm1, %v3269_v21, -inf }
 0x15b   : > { %v696_v3 = vmax.f32 %v692_v59, %v695_v58  ;;  %v709_v4 = vmax.f32 %v706_v61, %v708_v2  ;;  %v710_v5 = vsel %vm640_vm1, %v3271_v22, -inf  ;;  %v712_v10 = vsel %vm640_vm1, %v3273_v23, -inf }
 0x15c   : > { %v653_v11 = vadd.f32 %v652_v34, %v651_v63  ;;  %v672_v12 = vadd.f32 %v671_v43, %v670_v0  ;;  %v698_v17 = vmax.f32 %v694_v1, %v697_v60  ;;  %v711_v18 = vmax.f32 %v707_v62, %v710_v5 }
 0x15d   : > { %v713_v27 = vmax.f32 %v709_v4, %v712_v10  ;;  %v714_v28 = vsel %vm640_vm1, %v3275_v24, -inf  ;;  %v716_v29 = vsel %vm640_vm1, %v3277_v25, -inf  ;;  %v718_v30 = vsel %vm640_vm1, %v3279_v26, -inf  ;;  %v803_v10 = vld [vmem:[%s3235_s24] sm:$0xf] }
 0x15e   : > { %v655_v31 = vadd.f32 %v654_v35, %v653_v11  ;;  %v674_v32 = vadd.f32 %v673_v44, %v672_v12  ;;  %v699_v33 = vmax.f32 %v696_v3, %v698_v17  ;;  %v715_v36 = vmax.f32 %v711_v18, %v714_v28  ;;  %v2015_v12 = vld [vmem:[%s518_s25] ss:$0 sm:$0xff] }
 0x15f   : > { %v717_v37 = vmax.f32 %v713_v27, %v716_v29  ;;  %v727_v47 = vlaneseq  ;;  %v817_v11 = vsel %vm815_vm3, %v803_v10, 0 }
 0x160   : > { %v656_v38 = vrot.slane %v655_v31, 4  ;;  %v676_v34 = vadd.f32 %v675_v45, %v674_v32  ;;  %v700_v39 = vrot.slane %v699_v33, 4  ;;  %v719_v40 = vmax.f32 %v715_v36, %v718_v30  ;;  %2124 = vmatpush3.bf16.msra.mxu1 %v817_v11  ;;  %v2019_v36 = vld [vmem:[%s535_s15] ss:$0 sm:$0xff] }
 0x161   : > { %v728_v54 = vshrl.u32 %v727_v47, 7 }
 0x162   : > { %v657_v41 = vadd.f32 %v656_v38, %v655_v31  ;;  %v677_v42 = vrot.slane %v676_v34, 4  ;;  %v701_v43 = vmax.f32 %v699_v33, %v700_v39  ;;  %v720_v46 = vmax.f32 %v717_v37, %v719_v40 }
 0x163   : > { %vm729_vm2 = vcmp.eq.s32.totalorder %v728_v54, 0 }
 0x164   : > { %v658_v48 = vrot.slane %v657_v41, 2  ;;  %v678_v49 = vadd.f32 %v677_v42, %v676_v34  ;;  %v702_v50 = vrot.slane %v701_v43, 2  ;;  %v721_v51 = vrot.slane %v720_v46, 4 }
 0x166   : > { %v659_v52 = vadd.f32 %v658_v48, %v657_v41  ;;  %v679_v53 = vrot.slane %v678_v49, 2  ;;  %v703_v35 = vmax.f32 %v701_v43, %v702_v50  ;;  %v722_v44 = vmax.f32 %v720_v46, %v721_v51 }
 0x168   : > { %v660_v55 = vrot.slane %v659_v52, 1  ;;  %v680_v56 = vadd.f32 %v679_v53, %v678_v49  ;;  %v704_v57 = vrot.slane %v703_v35, 1  ;;  %v723_v45 = vrot.slane %v722_v44, 2 }
 0x16a   : > { %v661_v58 = vadd.f32 %v660_v55, %v659_v52  ;;  %v681_v59 = vrot.slane %v680_v56, 1  ;;  %v705_v60 = vmax.f32 %v703_v35, %v704_v57  ;;  %v724_v61 = vmax.f32 %v722_v44, %v723_v45 }
 0x16b   : > { %v3351_v35 = vsub.s32 0, %v728_v54 }
 0x16c   : > { %v682_v62 = vadd.f32 %v681_v59, %v680_v56  ;;  %v683_v63 = vmul.f32 0.015625, %v661_v58  ;;  %v725_v0 = vrot.slane %v724_v61, 1 }
 0x16e   : > { %v684_v1 = vmul.f32 0.015625, %v682_v62  ;;  %v726_v2 = vmax.f32 %v724_v61, %v725_v0  ;;  %v730_v3 = vsel %vm729_vm2, %v683_v63, %v705_v60 }
 0x170   : > { %v731_v4 = vsel %vm729_vm2, %v684_v1, %v726_v2 }
 0x171   : > { %v732_v5 = vpack.c.bf16 %v731_v4, %v730_v3 }
 0x173   : > { %2120 = vmatmul.mubr.msk.bf16.vlgmr.msra.gmra.mrb[0].mxu0 %vm640_vm1, %v732_v5 }
 0x246   : > { %v793_v17 = vpop.f32.mrb[0].mxu0 }
 0x247   : > { %v794_v18 = vadd.f32 %v2015_v12, %v793_v17  ;;  %v2121_v27 = vpop.f32.mrb[1].mxu0 }
 0x248   : > { %v796_v28 = vpop.f32.mrb[2].mxu0 }
 0x249   : > { %v797_v29 = vadd.f32 %v2015_v12, %v796_v28  ;;  %v2122_v30 = vpop.f32.mrb[3].mxu0  ;;  %v800_v31 = vmax.f32 %v794_v18, 0.0 }
 0x24b   : > { %v801_v32 = vmax.f32 %v797_v29, 0.0 }
 0x24d   : > { %v802_v33 = vpack.c.bf16 %v801_v32, %v800_v31 }
 0x24f   : > { %2126 = vmatmul.mubr.msk.bf16.vlgmr.msra.gmra.mrb[0].mxu1 %vm811_vm4, %v802_v33 }
 0x322   : > { %v853_v37 = vpop.f32.mrb[0].mxu1 }
 0x323   : > { %v854_v38 = vadd.f32 %v2019_v36, %v853_v37  ;;  %v2127_v34 = vpop.f32.mrb[1].mxu1 }
 0x324   : > { %v856_v39 = vpop.f32.mrb[2].mxu1 }
 0x325   : > { %v862_v40 = vrot.slane %v854_v38, 1  ;;  %v857_v41 = vadd.f32 %v2019_v36, %v856_v39  ;;  %v2128_v42 = vpop.f32.mrb[3].mxu1 }
 0x327   : > { %v866_v43 = vadd.f32 %v862_v40, %v854_v38  ;;  %v863_v46 = vrot.slane %v857_v41, 1 }
 0x329   : > { %v2021_v47 = vmul.f32 -1.442695, %v866_v43  ;;  %v867_v48 = vadd.f32 %v863_v46, %v857_v41 }
 0x32b   : > { %2342 = vpow2.f32 %v2021_v47  ;;  %v2022_v49 = vmul.f32 -1.442695, %v867_v48 }
 0x32d   : > { %2344 = vpow2.f32 %v2022_v49 }
 0x335   : > { %v2343_v50 = vpop.eup %2342 }
 0x336   : > { %v874_v51 = vadd.f32 1.0, %v2343_v50 }
 0x337   : > { %v2345_v52 = vpop.eup %2344 }
 0x338   : > { %2346 = vrcp.f32 %v874_v51  ;;  %v875_v53 = vadd.f32 1.0, %v2345_v52 }
 0x33a   : > { %2348 = vrcp.f32 %v875_v53 }
 0x342   : > { %v2347_v44 = vpop.eup %2346 }
 0x343   : > { %v883_v55 = vrot.slane %v2347_v44, %v3351_v35  ;;  %v936_v56 = vsub.f32 1.0, %v2347_v44 }
 0x344   : > { %v3358_v60 = vpop.eup %2348 }
 0x345   : > { %v888_v57 = vmul.f32 %v3249_v6, %v883_v55  ;;  %v889_v45 = vmul.f32 %v3251_v7, %v883_v55  ;;  %v890_v58 = vmul.f32 %v3253_v8, %v883_v55  ;;  %v891_v59 = vmul.f32 %v3255_v9, %v883_v55 }
 0x346   : > { %v892_v61 = vmul.f32 %v3257_v13, %v883_v55  ;;  %v893_v62 = vmul.f32 %v3259_v14, %v883_v55  ;;  %v894_v54 = vmul.f32 %v3261_v15, %v883_v55  ;;  %v895_v63 = vmul.f32 %v3263_v16, %v883_v55 }
 0x347   : > { %v904_v0 = vadd.f32 1.0, %v888_v57  ;;  %v905_v1 = vadd.f32 1.0, %v889_v45  ;;  %v906_v2 = vadd.f32 1.0, %v890_v58  ;;  %v907_v3 = vadd.f32 1.0, %v891_v59 }
 0x348   : > { %v908_v4 = vadd.f32 1.0, %v892_v61  ;;  %v909_v5 = vadd.f32 1.0, %v893_v62  ;;  %v910_v10 = vadd.f32 1.0, %v894_v54  ;;  %v911_v11 = vadd.f32 1.0, %v895_v63 }
 0x349   : > { %920 = vst.msk [vmem:[#allocation2] sm:$0xff] %vm640_vm1, %v904_v0  ;;  %921 = vst.msk [vmem:[#allocation2 + $0x8] sm:$0xff] %vm640_vm1, %v905_v1  ;;  %v941_v12 = vrot.slane %v936_v56, %v3351_v35  ;;  %v887_v17 = vrot.slane %v3358_v60, %v3351_v35  ;;  %v937_v18 = vsub.f32 1.0, %v3358_v60 }
 0x34a   : > { %922 = vst.msk [vmem:[#allocation2 + $0x10] sm:$0xff] %vm640_vm1, %v906_v2  ;;  %923 = vst.msk [vmem:[#allocation2 + $0x18] sm:$0xff] %vm640_vm1, %v907_v3 }
 0x34b   : > { %924 = vst.msk [vmem:[#allocation2 + $0x20] sm:$0xff] %vm640_vm1, %v908_v4  ;;  %925 = vst.msk [vmem:[#allocation2 + $0x28] sm:$0xff] %vm640_vm1, %v909_v5  ;;  %v946_v27 = vmul.f32 %v3249_v6, %v941_v12  ;;  %v947_v28 = vmul.f32 %v3251_v7, %v941_v12  ;;  %v948_v29 = vmul.f32 %v3253_v8, %v941_v12 }
 0x34c   : > { %926 = vst.msk [vmem:[#allocation2 + $0x30] sm:$0xff] %vm640_vm1, %v910_v10  ;;  %927 = vst.msk [vmem:[#allocation2 + $0x38] sm:$0xff] %vm640_vm1, %v911_v11  ;;  %v949_v30 = vmul.f32 %v3255_v9, %v941_v12  ;;  %v950_v31 = vmul.f32 %v3257_v13, %v941_v12  ;;  %v951_v32 = vmul.f32 %v3259_v14, %v941_v12 }
 0x34d   : > { %v952_v33 = vmul.f32 %v3261_v15, %v941_v12  ;;  %v953_v36 = vmul.f32 %v3263_v16, %v941_v12  ;;  %v962_v37 = vadd.f32 1.0, %v946_v27  ;;  %v963_v38 = vadd.f32 1.0, %v947_v28 }
 0x34e   : > { %v964_v34 = vadd.f32 1.0, %v948_v29  ;;  %v965_v39 = vadd.f32 1.0, %v949_v30  ;;  %v966_v40 = vadd.f32 1.0, %v950_v31  ;;  %v967_v6 = vadd.f32 1.0, %v951_v32 }
 0x34f   : > { %v968_v41 = vadd.f32 1.0, %v952_v33  ;;  %v969_v7 = vadd.f32 1.0, %v953_v36  ;;  %978 = vst.msk [vmem:[#allocation3] sm:$0xff] %vm640_vm1, %v962_v37  ;;  %979 = vst.msk [vmem:[#allocation3 + $0x8] sm:$0xff] %vm640_vm1, %v963_v38  ;;  %v896_v8 = vmul.f32 %v3265_v19, %v887_v17  ;;  %v897_v9 = vmul.f32 %v3267_v20, %v887_v17 }
 0x350   : > { %980 = vst.msk [vmem:[#allocation3 + $0x10] sm:$0xff] %vm640_vm1, %v964_v34  ;;  %981 = vst.msk [vmem:[#allocation3 + $0x18] sm:$0xff] %vm640_vm1, %v965_v39  ;;  %v898_v13 = vmul.f32 %v3269_v21, %v887_v17  ;;  %v899_v14 = vmul.f32 %v3271_v22, %v887_v17  ;;  %v900_v15 = vmul.f32 %v3273_v23, %v887_v17 }
 0x351   : > { %982 = vst.msk [vmem:[#allocation3 + $0x20] sm:$0xff] %vm640_vm1, %v966_v40  ;;  %983 = vst.msk [vmem:[#allocation3 + $0x28] sm:$0xff] %vm640_vm1, %v967_v6  ;;  %v901_v16 = vmul.f32 %v3275_v24, %v887_v17  ;;  %v902_v42 = vmul.f32 %v3277_v25, %v887_v17  ;;  %v903_v43 = vmul.f32 %v3279_v26, %v887_v17  ;;  %v912_v46 = vadd.f32 1.0, %v896_v8 }
 0x352   : > { %984 = vst.msk [vmem:[#allocation3 + $0x30] sm:$0xff] %vm640_vm1, %v968_v41  ;;  %985 = vst.msk [vmem:[#allocation3 + $0x38] sm:$0xff] %vm640_vm1, %v969_v7  ;;  %v913_v47 = vadd.f32 1.0, %v897_v9  ;;  %v914_v48 = vadd.f32 1.0, %v898_v13  ;;  %v915_v49 = vadd.f32 1.0, %v899_v14  ;;  %v916_v50 = vadd.f32 1.0, %v900_v15 }
 0x353   : > { %v917_v51 = vadd.f32 1.0, %v901_v16  ;;  %v918_v52 = vadd.f32 1.0, %v902_v42  ;;  %v919_v53 = vadd.f32 1.0, %v903_v43  ;;  %928 = vst.msk [vmem:[#allocation2 + $0x40] sm:$0xff] %vm640_vm1, %v912_v46  ;;  %v945_v44 = vrot.slane %v937_v18, %v3351_v35 }
 0x354   : > { %929 = vst.msk [vmem:[#allocation2 + $0x48] sm:$0xff] %vm640_vm1, %v913_v47  ;;  %930 = vst.msk [vmem:[#allocation2 + $0x50] sm:$0xff] %vm640_vm1, %v914_v48 }
 0x355   : > { %931 = vst.msk [vmem:[#allocation2 + $0x58] sm:$0xff] %vm640_vm1, %v915_v49  ;;  %932 = vst.msk [vmem:[#allocation2 + $0x60] sm:$0xff] %vm640_vm1, %v916_v50  ;;  %v954_v55 = vmul.f32 %v3265_v19, %v945_v44  ;;  %v955_v56 = vmul.f32 %v3267_v20, %v945_v44  ;;  %v956_v57 = vmul.f32 %v3269_v21, %v945_v44 }
 0x356   : > { %933 = vst.msk [vmem:[#allocation2 + $0x68] sm:$0xff] %vm640_vm1, %v917_v51  ;;  %934 = vst.msk [vmem:[#allocation2 + $0x70] sm:$0xff] %vm640_vm1, %v918_v52  ;;  %v957_v45 = vmul.f32 %v3271_v22, %v945_v44  ;;  %v958_v58 = vmul.f32 %v3273_v23, %v945_v44  ;;  %v959_v35 = vmul.f32 %v3275_v24, %v945_v44 }
 0x357   : > { %935 = vst.msk [vmem:[#allocation2 + $0x78] sm:$0xff] %vm640_vm1, %v919_v53  ;;  %v960_v59 = vmul.f32 %v3277_v25, %v945_v44  ;;  %v961_v60 = vmul.f32 %v3279_v26, %v945_v44  ;;  %v970_v61 = vadd.f32 1.0, %v954_v55  ;;  %v971_v62 = vadd.f32 1.0, %v955_v56 }
 0x358   : > { %v972_v54 = vadd.f32 1.0, %v956_v57  ;;  %v973_v63 = vadd.f32 1.0, %v957_v45  ;;  %v974_v0 = vadd.f32 1.0, %v958_v58  ;;  %v975_v19 = vadd.f32 1.0, %v959_v35 }
 0x359   : > { %v976_v1 = vadd.f32 1.0, %v960_v59  ;;  %v977_v20 = vadd.f32 1.0, %v961_v60  ;;  %986 = vst.msk [vmem:[#allocation3 + $0x40] sm:$0xff] %vm640_vm1, %v970_v61  ;;  %987 = vst.msk [vmem:[#allocation3 + $0x48] sm:$0xff] %vm640_vm1, %v971_v62 }
 0x35a   : > { %988 = vst.msk [vmem:[#allocation3 + $0x50] sm:$0xff] %vm640_vm1, %v972_v54  ;;  %989 = vst.msk [vmem:[#allocation3 + $0x58] sm:$0xff] %vm640_vm1, %v973_v63 }
 0x35b   : > { %990 = vst.msk [vmem:[#allocation3 + $0x60] sm:$0xff] %vm640_vm1, %v974_v0  ;;  %991 = vst.msk [vmem:[#allocation3 + $0x68] sm:$0xff] %vm640_vm1, %v975_v19 }
 0x35c   : > { %992 = vst.msk [vmem:[#allocation3 + $0x70] sm:$0xff] %vm640_vm1, %v976_v1  ;;  %993 = vst.msk [vmem:[#allocation3 + $0x78] sm:$0xff] %vm640_vm1, %v977_v20 }
 0x35d PF: > { %s3962_s20 = sld [smem:[#allocation29_spill]] }
 0x363   : > { %p2023_p4 = scmp.le.s32.totalorder %s3962_s20, 0 }
 0x365   : > { %997 = sbr.rel (%p2023_p4) target bundleno = 1641 (0x669), region = 100 }
 0x36c   : > { %v2350_v21 = vld [vmem:[%s493_s23] sm:$0xff]   ;;  %v2351_v22 = vld [vmem:[%s493_s23 + $0x8] sm:$0xff]   ;;  %vm1070_vm5 = vcmask 261120   ;;  %v3885_v63 = vmov 0.0   ;;  %vm2764_vm6 = vmmov 0   ;;  %v1195_v19 = vlaneseq }
 0x36d   : > { %2129 = vmatprep.subr.bf16.mxu0 %v2350_v21  ;;  %v3430_v23 = vld [vmem:[#allocation2] sm:$0xff]  ;;  %v3432_v24 = vld [vmem:[#allocation2 + $0x8] sm:$0xff]  ;;  %2180 = vmatprep.subr.bf16.mxu1 %v2350_v21  ;;  %v3440_v3 = vld [vmem:[#allocation2 + $0x10] sm:$0xff]  ;;  %vm1390_vm8 = vcmask 1043456   ;;  %vm1386_vm9 = vcmask 64512  }
 0x36e   : > { %v3434_v25 = vld [vmem:[#allocation3] sm:$0xff]  ;;  %2130 = vmatpush3.bf16.msra.mxu0 %v2350_v21  ;;  %v3436_v26 = vld [vmem:[#allocation3 + $0x8] sm:$0xff]  ;;  %v3442_v4 = vld [vmem:[#allocation2 + $0x18] sm:$0xff]  ;;  %2182 = vmatpush3.bf16.msra.mxu1 %v2350_v21  ;;  %v3541_v1 = vshrl.u32 %v1195_v19, 7 }
 0x36f   : > { %v1030_v2 = vadd.f32 %v3434_v25, %v3430_v23  ;;  %2131 = vmatprep.subr.bf16.mxu0 %v2351_v22  ;;  %v1031_v5 = vadd.f32 %v3436_v26, %v3432_v24  ;;  %v3446_v10 = vld [vmem:[#allocation3 + $0x10] sm:$0xff]  ;;  %v3448_v11 = vld [vmem:[#allocation3 + $0x18] sm:$0xff]  ;;  %v3450_v12 = vld [vmem:[#allocation2 + $0x20] sm:$0xff]  ;;  %2181 = vmatprep.subr.bf16.mxu1 %v2351_v22 }
 0x370   : > { %v1032_v17 = vadd.f32 %v3446_v10, %v3440_v3  ;;  %v1033_v18 = vadd.f32 %v3448_v11, %v3442_v4  ;;  %v3456_v27 = vld [vmem:[#allocation2 + $0x28] sm:$0xff]  ;;  %v3458_v28 = vld [vmem:[#allocation3 + $0x20] sm:$0xff]  ;;  %v3466_v33 = vld [vmem:[#allocation2 + $0x30] sm:$0xff]  ;;  %vm1304_vm7 = vcmp.eq.s32.totalorder %v3541_v1, 0 }
 0x371   : > { %v3460_v29 = vld [vmem:[#allocation3 + $0x28] sm:$0xff]  ;;  %v1046_v30 = vpack.c.bf16 %v1031_v5, %v1030_v2  ;;  %v1034_v31 = vadd.f32 %v3458_v28, %v3450_v12  ;;  %v3468_v36 = vld [vmem:[#allocation2 + $0x38] sm:$0xff]  ;;  %v3470_v38 = vld [vmem:[#allocation3 + $0x30] sm:$0xff] }
 0x372   : > { %v1035_v32 = vadd.f32 %v3460_v29, %v3456_v27  ;;  %2132 = vmatpush3.bf16.msra.mxu0 %v2351_v22  ;;  %v1047_v37 = vpack.c.bf16 %v1033_v18, %v1032_v17  ;;  %v3472_v34 = vld [vmem:[#allocation3 + $0x38] sm:$0xff]  ;;  %2183 = vmatpush3.bf16.msra.mxu1 %v2351_v22  ;;  %v3474_v39 = vld [vmem:[#allocation2 + $0x40] sm:$0xff]  ;;  %v3477_v6 = vld [vmem:[#allocation2 + $0x48] sm:$0xff]  ;;  %v1036_v8 = vadd.f32 %v3470_v38, %v3466_v33  ;;  %v3545_v22 = vsub.s32 0, %v3541_v1 }
 0x373   : > { %2133 = vmatprep.mubr.msk.bf16.mxu0 %vm1070_vm5, %v1046_v30  ;;  %v3479_v41 = vld [vmem:[#allocation3 + $0x40] sm:$0xff]  ;;  %v3481_v7 = vld [vmem:[#allocation3 + $0x48] sm:$0xff]  ;;  %v1037_v9 = vadd.f32 %v3472_v34, %v3468_v36  ;;  %v3501_v46 = vld [vmem:[#allocation2 + $0x70] sm:$0xff]  ;;  %2149 = vmatprep.subr.bf16.mxu1 %v3885_v63 }
 0x374   : > { %v1048_v40 = vpack.c.bf16 %v1035_v32, %v1034_v31  ;;  %3963 = vst [vmem:[#allocation38_spill] sm:$0xff] %v3481_v7  ;;  %v3488_v13 = vld [vmem:[#allocation2 + $0x60] sm:$0xff]  ;;  %v3490_v14 = vld [vmem:[#allocation2 + $0x68] sm:$0xff]  ;;  %v1038_v16 = vadd.f32 %v3479_v41, %v3474_v39  ;;  %v1039_v42 = vadd.f32 %v3481_v7, %v3477_v6  ;;  %v3503_v47 = vld [vmem:[#allocation2 + $0x78] sm:$0xff] }
 0x375   : > { %2134 = vmatmul.mubr.msk.bf16.vlgmr.msra.gmra.mrb[0].mxu0 %vm1070_vm5, %v1047_v37  ;;  %v3492_v15 = vld [vmem:[#allocation3 + $0x60] sm:$0xff]  ;;  %v3499_v43 = vld [vmem:[#allocation3 + $0x68] sm:$0xff]  ;;  %3966 = vst [vmem:[#allocation41_spill] sm:$0xff] %v3503_v47  ;;  %v3505_v48 = vld [vmem:[#allocation3 + $0x70] sm:$0xff]  ;;  %v1049_v52 = vpack.c.bf16 %v1037_v9, %v1036_v8 }
 0x376   : > { %3964 = vst [vmem:[#allocation39_spill] sm:$0xff] %v3492_v15  ;;  %2137 = vmatprep.mubr.msk.bf16.mxu0 %vm1070_vm5, %v1048_v40  ;;  %3965 = vst [vmem:[#allocation40_spill] sm:$0xff] %v3499_v43  ;;  %v3507_v49 = vld [vmem:[#allocation3 + $0x78] sm:$0xff]  ;;  %v1042_v50 = vadd.f32 %v3492_v15, %v3488_v13  ;;  %v1043_v51 = vadd.f32 %v3499_v43, %v3490_v14  ;;  %v3513_v53 = vld [vmem:[#allocation2 + $0x50] sm:$0xff]  ;;  %v1050_v55 = vpack.c.bf16 %v1039_v42, %v1038_v16 }
 0x377   : > { %3967 = vst [vmem:[#allocation42_spill] sm:$0xff] %v3505_v48  ;;  %3968 = vst [vmem:[#allocation43_spill] sm:$0xff] %v3507_v49  ;;  %v3515_v44 = vld [vmem:[#allocation2 + $0x58] sm:$0xff]  ;;  %v3517_v56 = vld [vmem:[#allocation3 + $0x50] sm:$0xff]  ;;  %v1044_v58 = vadd.f32 %v3505_v48, %v3501_v46  ;;  %v1045_v35 = vadd.f32 %v3507_v49, %v3503_v47 }
 0x378   : > { %3969 = vst [vmem:[#allocation44_spill] sm:$0xff] %v3517_v56  ;;  %v3519_v57 = vld [vmem:[#allocation3 + $0x58] sm:$0xff]  ;;  %v1052_v45 = vpack.c.bf16 %v1043_v51, %v1042_v50  ;;  %v1040_v60 = vadd.f32 %v3517_v56, %v3513_v53  ;;  %v1192_v20 = vld [vmem:[%s3225_s17] sm:$0x1] }
 0x379   : > { %3970 = vst [vmem:[#allocation45_spill] sm:$0xff] %v3519_v57  ;;  %v1053_v59 = vpack.c.bf16 %v1045_v35, %v1044_v58  ;;  %v1041_v61 = vadd.f32 %v3519_v57, %v3515_v44  ;;  %v2352_v54 = vld [vmem:[%s3227_s10] sm:$0xff]   ;;  %v2353_v0 = vld [vmem:[%s3227_s10 + $0x8] sm:$0xff]   ;;  %v1193_v21 = vmul.f32 2.0, %v1192_v20 }
 0x37a   : > { %2145 = vmatprep.mubr.msk.bf16.mxu1 %vm1070_vm5, %v1052_v45 }
 0x37b   : > { %2146 = vmatmul.mubr.msk.bf16.vlgmr.msra.gmra.mrb[0].mxu1 %vm1070_vm5, %v1053_v59  ;;  %v1051_v62 = vpack.c.bf16 %v1041_v61, %v1040_v60  ;;  %v1198_v2 = vrot.slane %v1193_v21, %v3545_v22 }
 0x37c   : > { %2153 = vmatprep.mubr.msk.bf16.mxu1 %vm2764_vm6, %v3885_v63  ;;  %2150 = vmatpush3.bf16.msra.mxu1 %v2352_v54 }
 0x37d   : > { %2138 = vmatmul.mubr.msk.bf16.gmra.mrb[4].mxu0 %vm1070_vm5, %v1049_v52  ;;  %2151 = vmatprep.subr.bf16.mxu1 %v3885_v63 }
 0x37e   : > { %2141 = vmatprep.mubr.msk.bf16.mxu0 %vm1070_vm5, %v1050_v55 }
 0x380   : > { %2152 = vmatpush3.bf16.msra.mxu1 %v2353_v0 }
 0x381   : > { %2157 = vmatprep.subr.bf16.mxu1 %v3885_v63 }
 0x385   : > { %2142 = vmatmul.mubr.msk.bf16.gmra.mrb[8].mxu0 %vm1070_vm5, %v1051_v62 }
 0x448   : > { %v2135_v5 = vpop.f32.mrb[0].mxu0 }
 0x449   : > { %v1129_v17 = vpop.f32.mrb[1].mxu0  ;;  %v3550_v32 = vadd.f32 %v2135_v5, %v1198_v2 }
 0x44a   : > { %v3548_v18 = vadd.f32 %v1198_v2, %v1129_v17  ;;  %v2136_v30 = vpop.f32.mrb[2].mxu0 }
 0x44b   : > { %v1132_v31 = vpop.f32.mrb[3].mxu0  ;;  %v3556_v8 = vadd.f32 %v2136_v30, %v1198_v2  ;;  %v1219_v42 = vsel %vm1070_vm5, %v3550_v32, 0.0  ;;  %v1262_v17 = vsel %vm1070_vm5, %v3550_v32, -inf }
 0x44c   : > { %v3552_v37 = vadd.f32 %v1198_v2, %v1132_v31  ;;  %v1216_v40 = vsel %vm1070_vm5, %v3548_v18, 0.0  ;;  %v1260_v30 = vsel %vm1070_vm5, %v3548_v18, -inf }
 0x44d   : > { %v1221_v45 = vsel %vm1070_vm5, %v3556_v8, 0.0  ;;  %v1264_v60 = vsel %vm1070_vm5, %v3556_v8, -inf }
 0x44e   : > { %v1217_v9 = vsel %vm1070_vm5, %v3552_v37, 0.0  ;;  %v2147_v55 = vpop.f32.mrb[0].mxu1  ;;  %v1261_v0 = vsel %vm1070_vm5, %v3552_v37, -inf }
 0x44f   : > { %v1218_v16 = vadd.f32 %v1217_v9, %v1216_v40  ;;  %v1177_v59 = vpop.f32.mrb[1].mxu1 }
 0x450   : > { %v2139_v50 = vpop.f32.mrb[4].mxu0  ;;  %v2148_v54 = vpop.f32.mrb[2].mxu1  ;;  %v3590_v63 = vadd.f32 %v1198_v2, %v1177_v59 }
 0x451   : > { %v1220_v51 = vadd.f32 %v1219_v42, %v1218_v16  ;;  %v1145_v52 = vpop.f32.mrb[5].mxu0  ;;  %v3570_v19 = vadd.f32 %v2139_v50, %v1198_v2  ;;  %v1180_v5 = vpop.f32.mrb[3].mxu1  ;;  %v1265_v42 = vmax.f32 %v1261_v0, %v1264_v60 }
 0x452   : > { %v3564_v58 = vadd.f32 %v1198_v2, %v1145_v52  ;;  %v2140_v35 = vpop.f32.mrb[6].mxu0  ;;  %v3594_v48 = vadd.f32 %v1198_v2, %v1180_v5 }
 0x453   : > { %v1222_v61 = vadd.f32 %v1221_v45, %v1220_v51  ;;  %v1148_v62 = vpop.f32.mrb[7].mxu0  ;;  %v3580_v40 = vadd.f32 %v2140_v35, %v1198_v2  ;;  %v1263_v51 = vmax.f32 %v1260_v30, %v1262_v17  ;;  %v1227_v52 = vsel %vm1070_vm5, %v3570_v19, 0.0 }
 0x454   : > { %v1223_v20 = vsel %vm1070_vm5, %v3564_v58, 0.0  ;;  %v3574_v21 = vadd.f32 %v1198_v2, %v1148_v62  ;;  %v1266_v45 = vsel %vm1070_vm5, %v3564_v58, -inf  ;;  %v1270_v60 = vsel %vm1070_vm5, %v3570_v19, -inf }
 0x455   : > { %v1224_v31 = vadd.f32 %v1223_v20, %v1222_v61  ;;  %v1229_v0 = vsel %vm1070_vm5, %v3580_v40, 0.0  ;;  %v1267_v59 = vmax.f32 %v1263_v51, %v1266_v45  ;;  %v1287_v51 = vsel %vm1070_vm5, %v3590_v63, -inf }
 0x456   : > { %v1225_v9 = vsel %vm1070_vm5, %v3574_v21, 0.0  ;;  %v1268_v16 = vsel %vm1070_vm5, %v3574_v21, -inf  ;;  %v1289_v45 = vsel %vm1070_vm5, %v3594_v48, -inf }
 0x457   : > { %v1226_v50 = vadd.f32 %v1225_v9, %v1224_v31  ;;  %v1269_v61 = vmax.f32 %v1265_v42, %v1268_v16  ;;  %v3602_v31 = vadd.f32 %v2147_v55, %v1198_v2  ;;  %v1272_v9 = vsel %vm1070_vm5, %v3580_v40, -inf }
 0x458   : > { %v2143_v62 = vpop.f32.mrb[8].mxu0 }
 0x459   : > { %v1228_v35 = vadd.f32 %v1227_v52, %v1226_v50  ;;  %v3592_v20 = vadd.f32 %v2143_v62, %v1198_v2  ;;  %v1161_v49 = vpop.f32.mrb[9].mxu0  ;;  %v1273_v55 = vmax.f32 %v1269_v61, %v1272_v9 }
 0x45a   : > { %v3600_v17 = vadd.f32 %v1198_v2, %v1161_v49  ;;  %v2144_v30 = vpop.f32.mrb[10].mxu0  ;;  %v3614_v49 = vadd.f32 %v2148_v54, %v1198_v2  ;;  %v1271_v54 = vmax.f32 %v1267_v59, %v1270_v60  ;;  %v1244_v60 = vsel %vm1070_vm5, %v3590_v63, 0.0 }
 0x45b   : > { %3971 = vst [vmem:[#allocation46_spill] sm:$0xff] %v3592_v20  ;;  %v1230_v16 = vadd.f32 %v1229_v0, %v1228_v35  ;;  %v1283_v5 = vsel %vm1070_vm5, %v3592_v20, -inf  ;;  %v1164_v42 = vpop.f32.mrb[11].mxu0  ;;  %v3610_v52 = vadd.f32 %v2144_v30, %v1198_v2 }
 0x45c   : > { %3972 = vst [vmem:[#allocation47_spill] sm:$0xff] %v3600_v17  ;;  %v1281_v50 = vsel %vm1070_vm5, %v3600_v17, -inf  ;;  %v3612_v62 = vadd.f32 %v1198_v2, %v1164_v42  ;;  %v1237_v35 = vsel %vm1070_vm5, %v3600_v17, 0.0  ;;  %v1240_v42 = vsel %vm1070_vm5, %v3592_v20, 0.0 }
 0x45d   : > { %v1284_v43 = vmax.f32 %v1281_v50, %v1283_v5  ;;  %v1285_v0 = vsel %vm1070_vm5, %v3610_v52, -inf  ;;  %v1231_v61 = vrot.slane %v1230_v16, 4  ;;  %v1291_v50 = vsel %vm1070_vm5, %v3602_v31, -inf }
 0x45e   : > { %3973 = vst [vmem:[#allocation48_spill] sm:$0xff] %v3612_v62  ;;  %v1238_v30 = vsel %vm1070_vm5, %v3612_v62, 0.0  ;;  %v1282_v2 = vsel %vm1070_vm5, %v3612_v62, -inf  ;;  %v1293_v57 = vsel %vm1070_vm5, %v3614_v49, -inf  ;;  %v1274_v56 = vmax.f32 %v1271_v54, %v1273_v55 }
 0x45f   : > { %v1239_v9 = vadd.f32 %v1238_v30, %v1237_v35  ;;  %v1286_v5 = vmax.f32 %v1282_v2, %v1285_v0  ;;  %v1288_v15 = vmax.f32 %v1284_v43, %v1287_v51  ;;  %v1242_v62 = vsel %vm1070_vm5, %v3610_v52, 0.0 }
 0x460   : > { %v1232_v59 = vadd.f32 %v1231_v61, %v1230_v16  ;;  %v1275_v2 = vrot.slane %v1274_v56, 4  ;;  %v1246_v43 = vsel %vm1070_vm5, %v3594_v48, 0.0 }
 0x461   : > { %v1241_v7 = vadd.f32 %v1240_v42, %v1239_v9  ;;  %v1290_v17 = vmax.f32 %v1286_v5, %v1289_v45  ;;  %v1292_v0 = vmax.f32 %v1288_v15, %v1291_v50  ;;  %v1248_v45 = vsel %vm1070_vm5, %v3602_v31, 0.0 }
 0x462   : > { %v1233_v51 = vrot.slane %v1232_v59, 2  ;;  %v1276_v9 = vmax.f32 %v1274_v56, %v1275_v2 }
 0x463   : > { %v1243_v35 = vadd.f32 %v1242_v62, %v1241_v7  ;;  %v1294_v30 = vmax.f32 %v1290_v17, %v1293_v57  ;;  %v1250_v7 = vsel %vm1070_vm5, %v3614_v49, 0.0 }
 0x464   : > { %v1234_v15 = vadd.f32 %v1233_v51, %v1232_v59  ;;  %v1277_v17 = vrot.slane %v1276_v9, 2 }
 0x465   : > { %v1245_v20 = vadd.f32 %v1244_v60, %v1243_v35  ;;  %v1295_v47 = vmax.f32 %v1292_v0, %v1294_v30 }
 0x466   : > { %v1235_v61 = vrot.slane %v1234_v15, 1  ;;  %v1278_v60 = vmax.f32 %v1276_v9, %v1277_v17  ;;  %v3974_v9 = vmov 0.0  }
 0x467   : > { %v1247_v55 = vadd.f32 %v1246_v43, %v1245_v20  ;;  %v1296_v54 = vrot.slane %v1295_v47, 4 }
 0x468   : > { %v1236_v30 = vadd.f32 %v1235_v61, %v1234_v15  ;;  %v1279_v56 = vrot.slane %v1278_v60, 1 }
 0x469   : > { %v1249_v5 = vadd.f32 %v1248_v45, %v1247_v55  ;;  %v1297_v42 = vmax.f32 %v1295_v47, %v1296_v54 }
 0x46a   : > { %v1258_v55 = vmul.f32 0.015625, %v1236_v30  ;;  %v1280_v51 = vmax.f32 %v1278_v60, %v1279_v56 }
 0x46b   : > { %v1251_v57 = vadd.f32 %v1250_v7, %v1249_v5  ;;  %v1298_v62 = vrot.slane %v1297_v42, 2 }
 0x46c   : > { %v1305_v45 = vsel %vm1304_vm7, %v1258_v55, %v1280_v51 }
 0x46d   : > { %v1252_v16 = vrot.slane %v1251_v57, 4  ;;  %v1299_v20 = vmax.f32 %v1297_v42, %v1298_v62  ;;  %v1378_v42 = vld [vmem:[%s3235_s24] sm:$0xf] }
 0x46e   : > { %v1392_v15 = vsel %vm1390_vm8, %v1378_v42, 0 }
 0x46f   : > { %v1253_v50 = vadd.f32 %v1252_v16, %v1251_v57  ;;  %v1300_v2 = vrot.slane %v1299_v20, 1  ;;  %v2034_v57 = vld [vmem:[%s518_s25] ss:$0 sm:$0xff] }
 0x471   : > { %v1254_v35 = vrot.slane %v1253_v50, 2  ;;  %v1301_v54 = vmax.f32 %v1299_v20, %v1300_v2 }
 0x473   : > { %v1255_v0 = vadd.f32 %v1254_v35, %v1253_v50 }
 0x475   : > { %v1256_v43 = vrot.slane %v1255_v0, 1 }
 0x477   : > { %v1257_v47 = vadd.f32 %v1256_v43, %v1255_v0  ;;  %v2038_v0 = vld [vmem:[%s535_s15] ss:$0 sm:$0xff] }
 0x479   : > { %v1259_v59 = vmul.f32 0.015625, %v1257_v47 }
 0x47b   : > { %v1306_v5 = vsel %vm1304_vm7, %v1259_v59, %v1301_v54 }
 0x47c   : > { %v1307_v7 = vpack.c.bf16 %v1306_v5, %v1305_v45 }
 0x47e   : > { %2154 = vmatmul.mubr.msk.bf16.vlgmr.msra.gmra.mrb[4].mxu1 %vm1070_vm5, %v1307_v7 }
 0x47f   : > { %2159 = vmatprep.mubr.msk.bf16.mxu1 %vm2764_vm6, %v3974_v9  ;;  %2158 = vmatpush3.bf16.msra.mxu1 %v1392_v15 }
 0x551   : > { %v1368_v17 = vpop.f32.mrb[4].mxu1 }
 0x552   : > { %v1369_v1 = vadd.f32 %v2034_v57, %v1368_v17  ;;  %v2155_v16 = vpop.f32.mrb[5].mxu1  ;;  %v1479_v17 = vmul.f32 2.0, %v3430_v23  ;;  %v1557_v23 = vmul.f32 2.0, %v3458_v28  ;;  %v3680_v28 = vmul.f32 2.0, %v3513_v53 }
 0x553   : > { %v1371_v62 = vpop.f32.mrb[6].mxu1  ;;  %v1553_v16 = vmul.f32 2.0, %v3434_v25  ;;  %v1485_v25 = vmul.f32 2.0, %v3466_v33 }
 0x554   : > { %v1372_v61 = vadd.f32 %v2034_v57, %v1371_v62  ;;  %v2156_v50 = vpop.f32.mrb[7].mxu1  ;;  %v1375_v60 = vmax.f32 %v1369_v1, 0.0  ;;  %v1480_v1 = vmul.f32 2.0, %v3432_v24  ;;  %v1554_v62 = vmul.f32 2.0, %v3436_v26 }
 0x555   : > { %v1482_v50 = vmul.f32 2.0, %v3442_v4  ;;  %v1558_v24 = vmul.f32 2.0, %v3460_v29  ;;  %v1486_v26 = vmul.f32 2.0, %v3468_v36  ;;  %v1560_v4 = vmul.f32 2.0, %v3472_v34 }
 0x556   : > { %v1376_v35 = vmax.f32 %v1372_v61, 0.0  ;;  %v1481_v61 = vmul.f32 2.0, %v3440_v3  ;;  %v1559_v3 = vmul.f32 2.0, %v3470_v38 }
 0x558   : > { %v1377_v20 = vpack.c.bf16 %v1376_v35, %v1375_v60  ;;  %v1555_v60 = vmul.f32 2.0, %v3446_v10  ;;  %v1556_v35 = vmul.f32 2.0, %v3448_v11  ;;  %v3670_v10 = vmul.f32 2.0, %v3474_v39 }
 0x55a   : > { %2160 = vmatmul.mubr.msk.bf16.vlgmr.msra.gmra.mrb[8].mxu1 %vm1386_vm9, %v1377_v20  ;;  %v1483_v20 = vmul.f32 2.0, %v3450_v12  ;;  %v3674_v12 = vmul.f32 2.0, %v3477_v6 }
 0x62d   : > { %v1428_v30 = vpop.f32.mrb[8].mxu1 }
 0x62e   : > { %v1429_v43 = vadd.f32 %v2038_v0, %v1428_v30  ;;  %v2161_v56 = vpop.f32.mrb[9].mxu1 }
 0x62f   : > { %v1431_v2 = vpop.f32.mrb[10].mxu1 }
 0x630   : > { %v1437_v47 = vrot.slane %v1429_v43, 1  ;;  %v1432_v55 = vadd.f32 %v2038_v0, %v1431_v2  ;;  %v2162_v59 = vpop.f32.mrb[11].mxu1  ;;  %v1484_v0 = vmul.f32 2.0, %v3456_v27  ;;  %v3677_v27 = vmul.f32 2.0, %v3479_v41 }
 0x632   : > { %v1441_v51 = vadd.f32 %v1437_v47, %v1429_v43  ;;  %v1438_v54 = vrot.slane %v1432_v55, 1 }
 0x634   : > { %v2040_v45 = vmul.f32 -1.442695, %v1441_v51  ;;  %v1442_v5 = vadd.f32 %v1438_v54, %v1432_v55 }
 0x636   : > { %2354 = vpow2.f32 %v2040_v45  ;;  %v2041_v7 = vmul.f32 -1.442695, %v1442_v5  ;;  %v1490_v5 = vmul.f32 2.0, %v3515_v44 }
 0x638   : > { %2356 = vpow2.f32 %v2041_v7  ;;  %v1491_v7 = vmul.f32 2.0, %v3488_v13 }
 0x640   : > { %v2355_v9 = vpop.eup %2354 }
 0x641   : > { %v1449_v42 = vadd.f32 1.0, %v2355_v9  ;;  %v1492_v9 = vmul.f32 2.0, %v3490_v14 }
 0x642   : > { %v2357_v15 = vpop.eup %2356 }
 0x643   : > { %2358 = vrcp.f32 %v1449_v42  ;;  %v1450_v57 = vadd.f32 1.0, %v2357_v15  ;;  %v1493_v15 = vmul.f32 2.0, %v3501_v46 }
 0x645   : > { %2360 = vrcp.f32 %v1450_v57  ;;  %v3975_v57 = vld [vmem:[#allocation41_spill] sm:$0xff] }
 0x64d   : > { %v2359_v30 = vpop.eup %2358 }
 0x64e   : > { %v1458_v11 = vrot.slane %v2359_v30, %v3545_v22  ;;  %v1527_v29 = vsub.f32 1.0, %v2359_v30 }
 0x64f   : > { %v3690_v56 = vpop.eup %2360 }
 0x650   : > { %v1463_v33 = vmul.f32 %v1458_v11, %v3548_v18  ;;  %v1464_v36 = vmul.f32 %v1458_v11, %v3552_v37  ;;  %v1465_v38 = vmul.f32 %v1458_v11, %v3550_v32  ;;  %v1466_v34 = vmul.f32 %v1458_v11, %v3556_v8 }
 0x651   : > { %v1467_v39 = vmul.f32 %v1458_v11, %v3564_v58  ;;  %v1468_v6 = vmul.f32 %v1458_v11, %v3574_v21  ;;  %v1469_v43 = vmul.f32 %v1458_v11, %v3570_v19  ;;  %v1470_v41 = vmul.f32 %v1458_v11, %v3580_v40 }
 0x652   : > { %v1495_v53 = vadd.f32 %v1479_v17, %v1463_v33  ;;  %v1496_v2 = vadd.f32 %v1480_v1, %v1464_v36  ;;  %v1497_v47 = vadd.f32 %v1481_v61, %v1465_v38  ;;  %v1498_v55 = vadd.f32 %v1482_v50, %v1466_v34 }
 0x653   : > { %v1499_v59 = vadd.f32 %v1483_v20, %v1467_v39  ;;  %v1500_v51 = vadd.f32 %v1484_v0, %v1468_v6  ;;  %v1501_v54 = vadd.f32 %v1485_v25, %v1469_v43  ;;  %v1502_v45 = vadd.f32 %v1486_v26, %v1470_v41  ;;  %v3979_v41 = vld [vmem:[#allocation38_spill] sm:$0xff] }
 0x654   : > { %1511 = vst.msk [vmem:[#allocation2] sm:$0xff] %vm1070_vm5, %v1495_v53  ;;  %1512 = vst.msk [vmem:[#allocation2 + $0x8] sm:$0xff] %vm1070_vm5, %v1496_v2  ;;  %v1532_v42 = vrot.slane %v1527_v29, %v3545_v22  ;;  %v1494_v17 = vmul.f32 2.0, %v3975_v57  ;;  %v1462_v13 = vrot.slane %v3690_v56, %v3545_v22  ;;  %v1528_v14 = vsub.f32 1.0, %v3690_v56  ;;  %v3980_v53 = vld [vmem:[#allocation44_spill] sm:$0xff] }
 0x655   : > { %1513 = vst.msk [vmem:[#allocation2 + $0x10] sm:$0xff] %vm1070_vm5, %v1497_v47  ;;  %1514 = vst.msk [vmem:[#allocation2 + $0x18] sm:$0xff] %vm1070_vm5, %v1498_v55  ;;  %v1562_v56 = vmul.f32 2.0, %v3979_v41  ;;  %v1563_v2 = vmul.f32 2.0, %v3980_v53  ;;  %v3981_v47 = vld [vmem:[#allocation45_spill] sm:$0xff] }
 0x656   : > { %1515 = vst.msk [vmem:[#allocation2 + $0x20] sm:$0xff] %vm1070_vm5, %v1499_v59  ;;  %1516 = vst.msk [vmem:[#allocation2 + $0x28] sm:$0xff] %vm1070_vm5, %v1500_v51  ;;  %v1537_v44 = vmul.f32 %v1532_v42, %v3548_v18  ;;  %v1538_v1 = vmul.f32 %v1532_v42, %v3552_v37  ;;  %v1539_v46 = vmul.f32 %v1532_v42, %v3550_v32  ;;  %v3976_v32 = vld [vmem:[#allocation47_spill] sm:$0xff]  ;;  %v1564_v55 = vmul.f32 2.0, %v3981_v47  ;;  %v3983_v59 = vld [vmem:[#allocation40_spill] sm:$0xff] }
 0x657   : > { %1517 = vst.msk [vmem:[#allocation2 + $0x30] sm:$0xff] %vm1070_vm5, %v1501_v54  ;;  %1518 = vst.msk [vmem:[#allocation2 + $0x38] sm:$0xff] %vm1070_vm5, %v1502_v45  ;;  %v1540_v61 = vmul.f32 %v1532_v42, %v3556_v8  ;;  %v1541_v50 = vmul.f32 %v1532_v42, %v3564_v58  ;;  %v1542_v20 = vmul.f32 %v1532_v42, %v3574_v21  ;;  %v3977_v58 = vld [vmem:[#allocation48_spill] sm:$0xff]  ;;  %v3978_v21 = vld [vmem:[#allocation46_spill] sm:$0xff]  ;;  %v1566_v51 = vmul.f32 2.0, %v3983_v59 }
 0x658   : > { %v1543_v0 = vmul.f32 %v1532_v42, %v3570_v19  ;;  %v1544_v30 = vmul.f32 %v1532_v42, %v3580_v40  ;;  %v1569_v25 = vadd.f32 %v1553_v16, %v1537_v44  ;;  %v1570_v26 = vadd.f32 %v1554_v62, %v1538_v1  ;;  %v3984_v54 = vld [vmem:[#allocation42_spill] sm:$0xff] }
 0x659   : > { %v1571_v11 = vadd.f32 %v1555_v60, %v1539_v46  ;;  %v1572_v29 = vadd.f32 %v1556_v35, %v1540_v61  ;;  %v1573_v33 = vadd.f32 %v1557_v23, %v1541_v50  ;;  %v1574_v18 = vadd.f32 %v1558_v24, %v1542_v20 }
 0x65a   : > { %v1575_v36 = vadd.f32 %v1559_v3, %v1543_v0  ;;  %v1576_v37 = vadd.f32 %v1560_v4, %v1544_v30  ;;  %1585 = vst.msk [vmem:[#allocation3] sm:$0xff] %vm1070_vm5, %v1569_v25  ;;  %1586 = vst.msk [vmem:[#allocation3 + $0x8] sm:$0xff] %vm1070_vm5, %v1570_v26  ;;  %v1471_v8 = vmul.f32 %v1462_v13, %v3976_v32  ;;  %v1567_v45 = vmul.f32 2.0, %v3984_v54 }
 0x65b   : > { %1587 = vst.msk [vmem:[#allocation3 + $0x10] sm:$0xff] %vm1070_vm5, %v1571_v11  ;;  %1588 = vst.msk [vmem:[#allocation3 + $0x18] sm:$0xff] %vm1070_vm5, %v1572_v29  ;;  %v1472_v19 = vmul.f32 %v1462_v13, %v3977_v58  ;;  %v1473_v40 = vmul.f32 %v1462_v13, %v3978_v21  ;;  %v1474_v16 = vmul.f32 %v1462_v13, %v3610_v52 }
 0x65c   : > { %1589 = vst.msk [vmem:[#allocation3 + $0x20] sm:$0xff] %vm1070_vm5, %v1573_v33  ;;  %1590 = vst.msk [vmem:[#allocation3 + $0x28] sm:$0xff] %vm1070_vm5, %v1574_v18  ;;  %v1475_v62 = vmul.f32 %v1462_v13, %v3590_v63  ;;  %v1476_v60 = vmul.f32 %v1462_v13, %v3594_v48  ;;  %v1477_v35 = vmul.f32 %v1462_v13, %v3602_v31 }
 0x65d   : > { %1591 = vst.msk [vmem:[#allocation3 + $0x30] sm:$0xff] %vm1070_vm5, %v1575_v36  ;;  %1592 = vst.msk [vmem:[#allocation3 + $0x38] sm:$0xff] %vm1070_vm5, %v1576_v37  ;;  %v1478_v23 = vmul.f32 %v1462_v13, %v3614_v49  ;;  %v1503_v24 = vadd.f32 %v3670_v10, %v1471_v8  ;;  %v1504_v3 = vadd.f32 %v3674_v12, %v1472_v19  ;;  %v3982_v12 = vld [vmem:[#allocation39_spill] sm:$0xff] }
 0x65e   : > { %v1505_v4 = vadd.f32 %v3680_v28, %v1473_v40  ;;  %v1506_v38 = vadd.f32 %v1490_v5, %v1474_v16  ;;  %v1507_v34 = vadd.f32 %v1491_v7, %v1475_v62  ;;  %v1508_v39 = vadd.f32 %v1492_v9, %v1476_v60  ;;  %v3985_v5 = vld [vmem:[#allocation43_spill] sm:$0xff] }
 0x65f   : > { %v1509_v6 = vadd.f32 %v1493_v15, %v1477_v35  ;;  %v1510_v43 = vadd.f32 %v1494_v17, %v1478_v23  ;;  %1519 = vst.msk [vmem:[#allocation2 + $0x40] sm:$0xff] %vm1070_vm5, %v1503_v24  ;;  %1520 = vst.msk [vmem:[#allocation2 + $0x48] sm:$0xff] %vm1070_vm5, %v1504_v3  ;;  %v1536_v10 = vrot.slane %v1528_v14, %v3545_v22  ;;  %v1565_v28 = vmul.f32 2.0, %v3982_v12 }
 0x660   : > { %1521 = vst.msk [vmem:[#allocation2 + $0x50] sm:$0xff] %vm1070_vm5, %v1505_v4  ;;  %1522 = vst.msk [vmem:[#allocation2 + $0x58] sm:$0xff] %vm1070_vm5, %v1506_v38  ;;  %v1568_v7 = vmul.f32 2.0, %v3985_v5 }
 0x661   : > { %1523 = vst.msk [vmem:[#allocation2 + $0x60] sm:$0xff] %vm1070_vm5, %v1507_v34  ;;  %1524 = vst.msk [vmem:[#allocation2 + $0x68] sm:$0xff] %vm1070_vm5, %v1508_v39  ;;  %v1545_v9 = vmul.f32 %v1536_v10, %v3976_v32  ;;  %v1546_v22 = vmul.f32 %v1536_v10, %v3977_v58  ;;  %v1547_v42 = vmul.f32 %v1536_v10, %v3978_v21 }
 0x662   : > { %1525 = vst.msk [vmem:[#allocation2 + $0x70] sm:$0xff] %vm1070_vm5, %v1509_v6  ;;  %1526 = vst.msk [vmem:[#allocation2 + $0x78] sm:$0xff] %vm1070_vm5, %v1510_v43  ;;  %v1548_v15 = vmul.f32 %v1536_v10, %v3610_v52  ;;  %v1549_v57 = vmul.f32 %v1536_v10, %v3590_v63  ;;  %v1550_v17 = vmul.f32 %v1536_v10, %v3594_v48 }
 0x663   : > { %v1551_v13 = vmul.f32 %v1536_v10, %v3602_v31  ;;  %v1552_v14 = vmul.f32 %v1536_v10, %v3614_v49  ;;  %v1577_v44 = vadd.f32 %v3677_v27, %v1545_v9  ;;  %v1578_v1 = vadd.f32 %v1562_v56, %v1546_v22 }
 0x664   : > { %v1579_v46 = vadd.f32 %v1563_v2, %v1547_v42  ;;  %v1580_v61 = vadd.f32 %v1564_v55, %v1548_v15  ;;  %v1581_v50 = vadd.f32 %v1565_v28, %v1549_v57  ;;  %v1582_v20 = vadd.f32 %v1566_v51, %v1550_v17 }
 0x665   : > { %v1583_v0 = vadd.f32 %v1567_v45, %v1551_v13  ;;  %v1584_v30 = vadd.f32 %v1568_v7, %v1552_v14  ;;  %1593 = vst.msk [vmem:[#allocation3 + $0x40] sm:$0xff] %vm1070_vm5, %v1577_v44  ;;  %1594 = vst.msk [vmem:[#allocation3 + $0x48] sm:$0xff] %vm1070_vm5, %v1578_v1 }
 0x666   : > { %1595 = vst.msk [vmem:[#allocation3 + $0x50] sm:$0xff] %vm1070_vm5, %v1579_v46  ;;  %1596 = vst.msk [vmem:[#allocation3 + $0x58] sm:$0xff] %vm1070_vm5, %v1580_v61 }
 0x667   : > { %1597 = vst.msk [vmem:[#allocation3 + $0x60] sm:$0xff] %vm1070_vm5, %v1581_v50  ;;  %1598 = vst.msk [vmem:[#allocation3 + $0x68] sm:$0xff] %vm1070_vm5, %v1582_v20 }
 0x668   : > { %1599 = vst.msk [vmem:[#allocation3 + $0x70] sm:$0xff] %vm1070_vm5, %v1583_v0  ;;  %1600 = vst.msk [vmem:[#allocation3 + $0x78] sm:$0xff] %vm1070_vm5, %v1584_v30 }
 0x669 PF: > { %s3986_s29 = sld [smem:[#allocation29_spill]] }
 0x66f   : > { %p2042_p1 = scmp.ne.s32.totalorder %s3986_s29, 3 }
 0x670   : > { %v1666_v48 = vld [vmem:[#allocation16] sm:$0xff] (!%p2042_p1)  ;;  %v1667_v63 = vld [vmem:[#allocation16 + $0x8] sm:$0xff] (!%p2042_p1)  ;;  %v1668_v31 = vld [vmem:[#allocation16 + $0x10] sm:$0xff] (!%p2042_p1)  ;;  %v2765_v52 = vmov (!%p2042_p1), 0.0|0.0   ;;  %vm2766_vm10 = vmmov (!%p2042_p1), 0   ;;  %v2767_v25 = vmov (!%p2042_p1), 0.0  }
 0x671   : > { %1604 = sbr.rel (%p2042_p1) target bundleno = 1904 (0x770), region = 104  ;;  %2174 = vmatprep.subr.bf16.mxu0 (!%p2042_p1), %v2765_v52  ;;  %v2175_v49 = vpack.c.bf16 (!%p2042_p1), %v1667_v63, %v1666_v48  ;;  %v1669_v27 = vld [vmem:[#allocation16 + $0x18] sm:$0xff] (!%p2042_p1)  ;;  %2171 = vmatprep.mubr.msk.f32.mxu0 (!%p2042_p1), %vm2766_vm10, %v2767_v25  ;;  %vm1621_vm11 = vcmask (!%p2042_p1), 261120   ;;  %v1607_v29 = vld [vmem:[#allocation2 + $0x10] sm:$0xff] (!%p2042_p1)  ;;  %v1608_v33 = vld [vmem:[#allocation2 + $0x18] sm:$0xff] (!%p2042_p1)  ;;  %vm1679_vm12 = vcmask (!%p2042_p1), 1041409  }
 0x672   : > { %v1605_v26 = vld [vmem:[#allocation2] sm:$0xff] (!%p2042_p1)  ;;  %v1606_v11 = vld [vmem:[#allocation2 + $0x8] sm:$0xff] (!%p2042_p1)  ;;  %v2178_v37 = vpack.c.bf16 (!%p2042_p1), %v1669_v27, %v1668_v31  ;;  %v1625_v58 = vsel (!%p2042_p1), %vm1621_vm11, %v1607_v29, 0.0  ;;  %v1615_v40 = vld [vmem:[#allocation2 + $0x50] sm:$0xff] (!%p2042_p1)  ;;  %v1627_v16 = vsel (!%p2042_p1), %vm1621_vm11, %v1608_v33, 0.0  ;;  %vm1778_vm13 = vcmask (!%p2042_p1), 73728  }
 0x673   : > { %v1622_v18 = vsel (!%p2042_p1), %vm1621_vm11, %v1605_v26, 0.0  ;;  %v1623_v36 = vsel (!%p2042_p1), %vm1621_vm11, %v1606_v11, 0.0  ;;  %2176 = vmatpush3.bf16.msra.mxu0 (!%p2042_p1), %v2175_v49  ;;  %v1609_v32 = vld [vmem:[#allocation2 + $0x20] sm:$0xff] (!%p2042_p1)  ;;  %v1614_v21 = vld [vmem:[#allocation2 + $0x48] sm:$0xff] (!%p2042_p1)  ;;  %v1616_v60 = vld [vmem:[#allocation2 + $0x58] sm:$0xff] (!%p2042_p1)  ;;  %v1646_v3 = vsel (!%p2042_p1), %vm1621_vm11, %v1615_v40, 0.0  ;;  %v1757_v26 = vlaneseq (!%p2042_p1) }
 0x674   : > { %v1624_v8 = vadd.f32 (!%p2042_p1), %v1623_v36, %v1622_v18  ;;  %2177 = vmatprep.subr.bf16.mxu0 (!%p2042_p1), %v2765_v52  ;;  %v1613_v19 = vld [vmem:[#allocation2 + $0x40] sm:$0xff] (!%p2042_p1)  ;;  %v1610_v62 = vld [vmem:[#allocation2 + $0x28] sm:$0xff] (!%p2042_p1)  ;;  %v1644_v24 = vsel (!%p2042_p1), %vm1621_vm11, %v1614_v21, 0.0  ;;  %v1629_v38 = vsel (!%p2042_p1), %vm1621_vm11, %v1609_v32, 0.0  ;;  %v1611_v39 = vld [vmem:[#allocation2 + $0x30] sm:$0xff] (!%p2042_p1)  ;;  %v1648_v43 = vsel (!%p2042_p1), %vm1621_vm11, %v1616_v60, 0.0 }
 0x675   : > { %v1643_v23 = vsel (!%p2042_p1), %vm1621_vm11, %v1613_v19, 0.0  ;;  %v1617_v4 = vld [vmem:[#allocation2 + $0x60] sm:$0xff] (!%p2042_p1)  ;;  %v1618_v41 = vld [vmem:[#allocation2 + $0x68] sm:$0xff] (!%p2042_p1)  ;;  %v1631_v56 = vsel (!%p2042_p1), %vm1621_vm11, %v1610_v62, 0.0  ;;  %v1612_v2 = vld [vmem:[#allocation2 + $0x38] sm:$0xff] (!%p2042_p1)  ;;  %v1633_v12 = vsel (!%p2042_p1), %vm1621_vm11, %v1611_v39, 0.0 }
 0x676   : > { %v1626_v35 = vadd.f32 (!%p2042_p1), %v1625_v58, %v1624_v8  ;;  %v1645_v34 = vadd.f32 (!%p2042_p1), %v1644_v24, %v1643_v23  ;;  %v1650_v55 = vsel (!%p2042_p1), %vm1621_vm11, %v1617_v4, 0.0  ;;  %v1619_v10 = vld [vmem:[#allocation2 + $0x70] sm:$0xff] (!%p2042_p1)  ;;  %v1652_v51 = vsel (!%p2042_p1), %vm1621_vm11, %v1618_v41, 0.0  ;;  %v1620_v54 = vld [vmem:[#allocation2 + $0x78] sm:$0xff] (!%p2042_p1)  ;;  %v2043_v33 = vld [vmem:[#allocation18] ss:$0 sm:$0xff] (!%p2042_p1) }
 0x677   : > { %2179 = vmatpush3.bf16.msra.mxu0 (!%p2042_p1), %v2178_v37  ;;  %v1635_v45 = vsel (!%p2042_p1), %vm1621_vm11, %v1612_v2, 0.0  ;;  %v1654_v9 = vsel (!%p2042_p1), %vm1621_vm11, %v1619_v10, 0.0  ;;  %v1656_v15 = vsel (!%p2042_p1), %vm1621_vm11, %v1620_v54, 0.0  ;;  %v2768_v27 = vmov (!%p2042_p1), 1966171168  }
 0x678   : > { %v1628_v6 = vadd.f32 %v1627_v16, %v1626_v35  ;;  %v1647_v53 = vadd.f32 %v1646_v3, %v1645_v34  ;;  %v1755_v25 = vunpack.c.l.s4 %v2768_v27  ;;  %v1758_v29 = vshrl.u32 %v1757_v26, 7 }
 0x67a   : > { %v1630_v47 = vadd.f32 %v1629_v38, %v1628_v6  ;;  %v1649_v28 = vadd.f32 %v1648_v43, %v1647_v53  ;;  %v1756_v11 = vunpack.c.0.s8 %v1755_v25 }
 0x67c   : > { %v1632_v59 = vadd.f32 %v1631_v56, %v1630_v47  ;;  %v1651_v5 = vadd.f32 %v1650_v55, %v1649_v28  ;;  %v1759_v18 = vsub.s32 %v1756_v11, %v1758_v29 }
 0x67e   : > { %v1634_v7 = vadd.f32 %v1633_v12, %v1632_v59  ;;  %v1653_v22 = vadd.f32 %v1652_v51, %v1651_v5 }
 0x680   : > { %v1636_v42 = vadd.f32 %v1635_v45, %v1634_v7  ;;  %v1655_v57 = vadd.f32 %v1654_v9, %v1653_v22 }
 0x682   : > { %v1637_v17 = vrot.slane %v1636_v42, 4  ;;  %v1657_v13 = vadd.f32 %v1656_v15, %v1655_v57 }
 0x684   : > { %v1638_v14 = vadd.f32 %v1637_v17, %v1636_v42  ;;  %v1658_v44 = vrot.slane %v1657_v13, 4 }
 0x686   : > { %v1639_v1 = vrot.slane %v1638_v14, 2  ;;  %v1659_v46 = vadd.f32 %v1658_v44, %v1657_v13 }
 0x688   : > { %v1640_v61 = vadd.f32 %v1639_v1, %v1638_v14  ;;  %v1660_v50 = vrot.slane %v1659_v46, 2 }
 0x68a   : > { %v1641_v20 = vrot.slane %v1640_v61, 1  ;;  %v1661_v0 = vadd.f32 %v1660_v50, %v1659_v46 }
 0x68c   : > { %v1642_v30 = vadd.f32 %v1641_v20, %v1640_v61  ;;  %v1662_v48 = vrot.slane %v1661_v0, 1 }
 0x68e   : > { %v1663_v63 = vadd.f32 %v1662_v48, %v1661_v0  ;;  %v1664_v31 = vmul.f32 0.015625, %v1642_v30 }
 0x690   : > { %v1665_v52 = vmul.f32 0.015625, %v1663_v63 }
 0x692   : > { %v1680_v49 = vsel %vm1679_vm12, %v1665_v52, %v1664_v31 }
 0x693   : > { %2172 = vmatmul.mubr.msk.f32.vlgmr.msra.gmra.mrb[0].mxu0 %vm1621_vm11, %v1680_v49 }
 0x766   : > { %v1749_v36 = vpop.f32.mrb[0].mxu0 }
 0x767   : > { %v1750_v37 = vadd.f32 %v2043_v33, %v1749_v36  ;;  %v2173_v32 = vpop.f32.mrb[1].mxu0 }
 0x769   : > { %v1760_v8 = vrot.slane %v1750_v37, %v1759_v18 }
 0x76b   : > { %v1761_v58 = vcombine.high %v1760_v8, %v1760_v8  ;;  %v1768_v19 = vrot.slane %v1760_v8, %v1759_v18 }
 0x76d   : > { %v1775_v21 = vrot.slane %v1761_v58, %v1759_v18  ;;  %1779 = vst.msk [vmem:[#allocation19] sm:$0x1] %vm1778_vm13, %v1768_v19 }
 0x76f   : > { %1780 = vst.msk [vmem:[#allocation19 + $0x1] sm:$0x1] %vm1778_vm13, %v1775_v21 }
 0x770 PF: > { %s3987_s18 = sld [smem:[#allocation31_spill]]  ;;  %s2769_s1 = smov [#allocation19]  }
 0x771   : > { %s1790_s22 = sshll.u32 %s2769_s1, 4  ;;  %s1791_s22 = int_to_ptr.vmem [resolvable:$true] %s1790_s22 }
 0x772   : > { %s2626_s3 = scalar_lea.vmem %s1791_s22, 32  ;;  %p2633_p8 = scmp.lt.s32.totalorder %s1791_s22, %s1791_s22 }
 0x773   : > { %p2627_p3 = scmp.ne.s32.totalorder %s1791_s22, %s2626_s3  ;;  %p2634_p5 = scmp.lt.s32.totalorder %s2626_s3, %s2626_s3 }
 0x775   : > { %p2635_p11 = por %p2634_p5, %p2633_p8 }
 0x776   : > { %p2248_p6 = scmp.eq.s32.totalorder %s3987_s18, 3 }
 0x778   : > { %p2628_p0 = pnand %p2627_p3, %p2248_p6 }
 0x77a   : > { %p2629_p9 = pneg %p2628_p0 }
 0x77c   : > { %p2636_p7 = pnand %p2635_p11, %p2629_p9 }
 0x77e   : > { %2639 = shalt.err (!%p2636_p7)
}
 0x77f   : > { %s3988_s26 = sld [smem:[#allocation53_spill]] }
 0x785   : > { %s2640_s7 = scalar_lea.hbm %s3988_s26, 32 }
 0x786   : > { %p2641_p12 = scmp.ne.s32.totalorder %s3988_s26, %s2640_s7  ;;  %p2646_p10 = scmp.lt.u32.totalorder %s2640_s7, %s3988_s26 }
 0x788   : > { %p2642_p2 = pnand %p2641_p12, %p2248_p6 }
 0x78a   : > { %p2643_p13 = pneg %p2642_p2 }
 0x78c   : > { %p2648_p4 = pnand %p2646_p10, %p2643_p13 }
 0x78e   : > { %2651 = shalt.err (!%p2648_p4)
}
 0x78f   : > { %s2770_s30 = smov 16   ;;  %s2771_s17 = smov 1  }
 0x790   : > { %2209 = dma.vmem_to_hbm [thread:$0]  (%p2248_p6), %s1791_s22, 32, %s3988_s26, [#allocation6], %s2770_s30, %s2770_s30, %s2771_s17  }
 0x791   : > { %2709 = dma.done.wait (%p2248_p6), [#allocation6], 32  }
 0x792   : > { %2711 = vsyncadd (%p2248_p6), [#allocation6], 4294967264 }
 0x793 PF: > { %s3989_s19 = sld [smem:[#allocation30_spill]]  ;;  %s3990_s30 = sld [smem:[#allocation26_spill]] }
 0x794   : > { %s3991_s10 = sld [smem:[#allocation27_spill]]  ;;  %s3992_s11 = sld [smem:[#allocation37_spill]] }
 0x795   : > { %s3993_s12 = sld [smem:[#allocation28_spill]]  ;;  %s3994_s25 = sld [smem:[#allocation36_spill]] }
 0x796   : > { %s3995_s24 = sld [smem:[#allocation35_spill]]  ;;  %s3996_s13 = smov %s2734_s14 }
 0x797   : > { %s3998_s15 = smov %s2742_s16 }
 0x799   : > { %s31_s17 = sadd.s32 1, %s3989_s19  }
 0x79a   : > { %p28_p1 = scmp.ge.s32.totalorder %s31_s17, 6  }
 0x79b   : > { %s3997_s14 = smov %s3994_s25 }
 0x79c   : > { %s3999_s16 = smov %s3995_s24  ;;  %30 = sbr.rel (!%p28_p1) target bundleno = 19 (0x13), region = 179 }
 0x7a3   :  { %1806 = vsyncpa [#allocation5], 1 }
 0x7a4   :  { %1808 = vsyncpa [#allocation5 + $0x1], 1 }
 0x7a5   :  { %1809 = vsyncpa [#allocation8], 1 }
 0x7a6   :  { %1811 = vsyncpa [#allocation8 + $0x1], 1 }
 0x7a7   :  { %1812 = vsyncpa [#allocation11], 1 }
 0x7a8   :  { %1814 = vsyncpa [#allocation11 + $0x1], 1 }
 0x7a9   :  { %1815 = vsyncpa [#allocation14], 1 }
 0x7aa   :  { %1817 = vsyncpa [#allocation14 + $0x1], 1 }
 0x7ab   :  { %1818 = vsyncpa [#allocation17], 1 }
 0x7ac   :  { %1819 = vsyncpa [#allocation6], 1 }
 0x7ad   :  { %1821 = vsyncpa [#allocation6 + $0x1], 1 }

</bundles_post_ra>
